<compile_context>
chip_gen: v7x
topology: tpu7x:2x2x1
jax: 0.10.0
libtpu: 0.0.40
codegen_flags: <defaults>
</compile_context>

<pallas_src>
import numpy as np
import jax
import jax.numpy as jnp
from jax import lax
from jax.experimental import pallas as pl
from jax.experimental.pallas import tpu as pltpu

# Problem configuration (categories chosen so W * C == 128 -> lane-dense slabs).
N, C, H, W = 2, 8, 16, 16
NUM_STEPS = 5
KH = KW = 3
HP, WP = H + KH - 1, W + KW - 1      # padded spatial dims (18, 18)
NH = N * H                           # 32  rows of the working slab
WC = W * C                           # 128 lanes = exactly one vreg width
WPC = WP * C                         # 144 lanes of a padded row

UNARY_WEIGHT = 0.8
PAIRWISE_WEIGHT = 0.6


def paccrf_kernel(u_ref, w_ref, g_ref, p_ref, o_ref, qpad_ref):
    """Full PacCRF mean-field inference in one kernel invocation.

    u_ref:    [NH, WC]      unary in (n,h)-row / (w*C + c)-lane layout
    w_ref:    [KH, WPC, WC] row-banded conv weight (3 dense matmul slabs)
    g_ref:    [WC, WC]      block-diag group-sum matrix for channel softmax
    p_ref:    [2]  (SMEM)   [unary_weight, pairwise_weight]
    o_ref:    [NH, WC]      output logQ (lane-dense 128-wide store)
    qpad_ref: [N, HP, WPC]  VMEM scratch holding spatially padded Q
    """
    uw = p_ref[0]
    pw = p_ref[1]
    unary = u_ref[...]
    gsum = g_ref[...]

    # Zero the padded scratch once; only its interior is rewritten each step,
    # so the zero border provides the conv's 'same' padding for every step.
    qpad_ref[...] = jnp.zeros_like(qpad_ref)

    ubase = unary * uw          # hoisted: loop-invariant unary * unary_weight
    logq = unary                # logQ arg is None -> logQ = unary

    for _ in range(NUM_STEPS):
        # --- per-pixel softmax over the C channels (lane index = w*C + c) ---
        # Subtracting the per-row max subtracts the same constant within each
        # C-lane group, so the group softmax is unchanged but exp() is safe.
        m = jnp.max(logq, axis=-1, keepdims=True)
        e = jnp.exp(logq - m)
        denom = jnp.dot(e, gsum, preferred_element_type=jnp.float32)
        q = e / denom                                        # [NH, WC]

        # --- scatter Q into the padded scratch interior ---------------------
        qpad_ref[:, 1:1 + H, C:C + WC] = q.reshape(N, H, WC)

        # --- 3x3 conv: 9 taps fused into 3 row-banded MXU matmuls -----------
        msg = None
        for dy in range(KH):
            slab = qpad_ref[:, dy:dy + H, :].reshape(NH, WPC)   # [32, 144]
            part = jnp.dot(slab, w_ref[dy],
                           preferred_element_type=jnp.float32)  # [32, 128]
            msg = part if msg is None else msg + part

        # --- mean-field update ----------------------------------------------
        logq = ubase - msg * pw

    o_ref[...] = logq           # final_output == 'log_Q'


def _build_banded_weight(w_oihw):
    """[C_out, C_in, KH, KW] conv weight -> [KH, WPC, WC] banded matmul slabs.

    band[dy][wp*C + ci, w*C + co] = w[co, ci, dy, wp - w]  for 0 <= wp-w < KW,
    so that sum_dy (padded_row_slab_dy @ band[dy]) == conv3x3(Q, 'same').
    """
    w_np = np.asarray(w_oihw, dtype=np.float32)
    band = np.zeros((KH, WPC, WC), dtype=np.float32)
    for dy in range(KH):
        for w in range(W):
            for dx in range(KW):
                wp = w + dx
                band[dy, wp * C:(wp + 1) * C, w * C:(w + 1) * C] = \
                    w_np[:, :, dy, dx].T
    return jnp.asarray(band)


def _group_sum_matrix():
    """[WC, WC] block-diagonal ones: (e @ G)[w*C+c] = sum_c' e[w*C+c']."""
    return jnp.asarray(np.kron(np.eye(W, dtype=np.float32),
                               np.ones((C, C), dtype=np.float32)))


def paccrf_forward(unary_nchw, edge_feat, conv_weight, unary_weight,
                   pairwise_weight):
    """PacCRF.forward(unary, edge_feat) for the 'na' pairwise-kernel config."""
    del edge_feat  # unused for an nn.Conv2d ('na') messenger, as in torch.

    # Layout plumbing (host/XLA side): NCHW -> lane-dense [N*H, W*C] slab.
    u_slab = jnp.transpose(unary_nchw, (0, 2, 3, 1)).reshape(NH, WC)
    w_banded = _build_banded_weight(conv_weight)
    gsum = _group_sum_matrix()
    params = jnp.array([unary_weight, pairwise_weight], dtype=jnp.float32)

    out_slab = pl.pallas_call(
        paccrf_kernel,
        out_shape=jax.ShapeDtypeStruct((NH, WC), jnp.float32),
        in_specs=[
            pl.BlockSpec(memory_space=pltpu.MemorySpace.VMEM),   # unary slab
            pl.BlockSpec(memory_space=pltpu.MemorySpace.VMEM),   # banded weight
            pl.BlockSpec(memory_space=pltpu.MemorySpace.VMEM),   # group-sum mat
            pl.BlockSpec(memory_space=pltpu.MemorySpace.SMEM),   # CRF scalars
        ],
        out_specs=pl.BlockSpec(memory_space=pltpu.MemorySpace.VMEM),
        scratch_shapes=[pltpu.VMEM((N, HP, WPC), jnp.float32)],
    )(u_slab, w_banded, gsum, params)

    # Back to PyTorch's NCHW convention.
    return jnp.transpose(out_slab.reshape(N, H, W, C), (0, 3, 1, 2))


def reference_forward(unary, conv_weight, unary_weight, pairwise_weight):
    """Pure-JAX reference of the same PacCRF configuration."""
    logq = unary
    for _ in range(NUM_STEPS):
        q = jax.nn.softmax(logq, axis=1)
        msg = lax.conv_general_dilated(
            q, conv_weight, window_strides=(1, 1),
            padding=((1, 1), (1, 1)),
            dimension_numbers=("NCHW", "OIHW", "NCHW"))
        logq = unary * unary_weight - msg * pairwise_weight
    return logq


if __name__ == "__main__":
    key = jax.random.PRNGKey(0)
    ku, ke, kw = jax.random.split(key, 3)

    # Deterministic synthetic inputs / parameters (no checkpoint).
    unary = jax.random.normal(ku, (N, C, H, W), dtype=jnp.float32)
    edge_feat = jax.random.normal(ke, (N, 3, H, W), dtype=jnp.float32)  # unused ('na')
    fan_in = C * KH * KW
    bound = 1.0 / (fan_in ** 0.5)
    conv_weight = jax.random.uniform(kw, (C, C, KH, KW),
                                     minval=-bound, maxval=bound,
                                     dtype=jnp.float32)

    out = paccrf_forward(unary, edge_feat, conv_weight,
                         UNARY_WEIGHT, PAIRWISE_WEIGHT)
    out = jax.block_until_ready(out)

    ref = reference_forward(unary, conv_weight, UNARY_WEIGHT, PAIRWISE_WEIGHT)
    assert out.shape == (N, C, H, W)
    assert jnp.allclose(out, ref, atol=1e-3, rtol=1e-3), "mismatch vs reference"

    print("KERNEL_OK")
</pallas_src>

<mosaic_0001>
module attributes {stable_mosaic.version = 11 : i64} {
  func.func @paccrf_kernel(%arg0: memref<32x128xf32, #tpu.memory_space<vmem>>, %arg1: memref<3x144x128xf32, #tpu.memory_space<vmem>>, %arg2: memref<128x128xf32, #tpu.memory_space<vmem>>, %arg3: memref<2xf32, #tpu.memory_space<smem>>, %arg4: memref<32x128xf32, #tpu.memory_space<vmem>>, %arg5: memref<2x18x144xf32, #tpu.memory_space<vmem>>) attributes {dimension_semantics = [], scalar_prefetch = 0 : i64, scratch_operands = 1 : i64, tpu.core_type = #tpu.core_type<tc>} {
    %c0 = arith.constant 0 : index
    %0 = memref.load %arg3[%c0] : memref<2xf32, #tpu.memory_space<smem>>
    %c1 = arith.constant 1 : index
    %1 = memref.load %arg3[%c1] : memref<2xf32, #tpu.memory_space<smem>>
    %c0_0 = arith.constant 0 : index
    %c0_1 = arith.constant 0 : index
    %2 = vector.load %arg0[%c0_0, %c0_1] : memref<32x128xf32, #tpu.memory_space<vmem>>, vector<32x128xf32>
    %c0_2 = arith.constant 0 : index
    %c0_3 = arith.constant 0 : index
    %3 = vector.load %arg2[%c0_2, %c0_3] : memref<128x128xf32, #tpu.memory_space<vmem>>, vector<128x128xf32>
    %cst = arith.constant 0.000000e+00 : f32
    %4 = vector.broadcast %cst : f32 to vector<2x18x144xf32>
    %c0_4 = arith.constant 0 : index
    %c0_5 = arith.constant 0 : index
    %c0_6 = arith.constant 0 : index
    %5 = vector.load %arg5[%c0_4, %c0_5, %c0_6] : memref<2x18x144xf32, #tpu.memory_space<vmem>>, vector<2x18x144xf32>
    tpu.vector_store %arg5[%c0_4, %c0_5, %c0_6], %4 {strides = array<i32>} : memref<2x18x144xf32, #tpu.memory_space<vmem>>, vector<2x18x144xf32>,
    %6 = vector.broadcast %0 : f32 to vector<32x128xf32>
    %7 = arith.mulf %2, %6 : vector<32x128xf32>
    %cst_7 = arith.constant dense<0xFF800000> : vector<32xf32>
    %8 = vector.multi_reduction <maximumf>, %2, %cst_7 [1] : vector<32x128xf32> to vector<32xf32>
    %9 = vector.shape_cast %8 : vector<32xf32> to vector<32x1xf32>
    %10 = vector.broadcast %9 : vector<32x1xf32> to vector<32x128xf32>
    %11 = arith.subf %2, %10 : vector<32x128xf32>
    %12 = math.exp %11 : vector<32x128xf32>
    %cst_8 = arith.constant dense<0.000000e+00> : vector<32x128xf32>
    %13 = tpu.matmul %12, %3, %cst_8 {dimension_numbers = #tpu.dot_dimension_numbers<[1], [0], [0], [1], [0, 0, 1, 1], [], []>} : vector<32x128xf32>, vector<128x128xf32>, vector<32x128xf32> -> vector<32x128xf32>
    %14 = arith.divf %12, %13 : vector<32x128xf32>
    %15 = vector.shape_cast %14 : vector<32x128xf32> to vector<2x16x128xf32>
    %c0_9 = arith.constant 0 : index
    %c1_10 = arith.constant 1 : index
    %c8 = arith.constant 8 : index
    %16 = vector.load %arg5[%c0_9, %c1_10, %c8] : memref<2x18x144xf32, #tpu.memory_space<vmem>>, vector<2x16x128xf32>
    tpu.vector_store %arg5[%c0_9, %c1_10, %c8], %15 {strides = array<i32>} : memref<2x18x144xf32, #tpu.memory_space<vmem>>, vector<2x16x128xf32>,
    %c0_11 = arith.constant 0 : index
    %c0_12 = arith.constant 0 : index
    %c0_13 = arith.constant 0 : index
    %17 = vector.load %arg5[%c0_11, %c0_12, %c0_13] : memref<2x18x144xf32, #tpu.memory_space<vmem>>, vector<2x16x144xf32>
    %18 = vector.shape_cast %17 : vector<2x16x144xf32> to vector<32x144xf32>
    %c0_14 = arith.constant 0 : index
    %c0_15 = arith.constant 0 : index
    %c0_16 = arith.constant 0 : index
    %19 = vector.load %arg1[%c0_14, %c0_15, %c0_16] : memref<3x144x128xf32, #tpu.memory_space<vmem>>, vector<1x144x128xf32>
    %20 = vector.shape_cast %19 : vector<1x144x128xf32> to vector<144x128xf32>
    %cst_17 = arith.constant dense<0.000000e+00> : vector<32x128xf32>
    %21 = tpu.matmul %18, %20, %cst_17 {dimension_numbers = #tpu.dot_dimension_numbers<[1], [0], [0], [1], [0, 0, 1, 1], [], []>} : vector<32x144xf32>, vector<144x128xf32>, vector<32x128xf32> -> vector<32x128xf32>
    %c0_18 = arith.constant 0 : index
    %c1_19 = arith.constant 1 : index
    %c0_20 = arith.constant 0 : index
    %22 = vector.load %arg5[%c0_18, %c1_19, %c0_20] : memref<2x18x144xf32, #tpu.memory_space<vmem>>, vector<2x16x144xf32>
    %23 = vector.shape_cast %22 : vector<2x16x144xf32> to vector<32x144xf32>
    %c1_21 = arith.constant 1 : index
    %c0_22 = arith.constant 0 : index
    %c0_23 = arith.constant 0 : index
    %24 = vector.load %arg1[%c1_21, %c0_22, %c0_23] : memref<3x144x128xf32, #tpu.memory_space<vmem>>, vector<1x144x128xf32>
    %25 = vector.shape_cast %24 : vector<1x144x128xf32> to vector<144x128xf32>
    %cst_24 = arith.constant dense<0.000000e+00> : vector<32x128xf32>
    %26 = tpu.matmul %23, %25, %cst_24 {dimension_numbers = #tpu.dot_dimension_numbers<[1], [0], [0], [1], [0, 0, 1, 1], [], []>} : vector<32x144xf32>, vector<144x128xf32>, vector<32x128xf32> -> vector<32x128xf32>
    %27 = arith.addf %21, %26 : vector<32x128xf32>
    %c0_25 = arith.constant 0 : index
    %c2 = arith.constant 2 : index
    %c0_26 = arith.constant 0 : index
    %28 = vector.load %arg5[%c0_25, %c2, %c0_26] : memref<2x18x144xf32, #tpu.memory_space<vmem>>, vector<2x16x144xf32>
    %29 = vector.shape_cast %28 : vector<2x16x144xf32> to vector<32x144xf32>
    %c2_27 = arith.constant 2 : index
    %c0_28 = arith.constant 0 : index
    %c0_29 = arith.constant 0 : index
    %30 = vector.load %arg1[%c2_27, %c0_28, %c0_29] : memref<3x144x128xf32, #tpu.memory_space<vmem>>, vector<1x144x128xf32>
    %31 = vector.shape_cast %30 : vector<1x144x128xf32> to vector<144x128xf32>
    %cst_30 = arith.constant dense<0.000000e+00> : vector<32x128xf32>
    %32 = tpu.matmul %29, %31, %cst_30 {dimension_numbers = #tpu.dot_dimension_numbers<[1], [0], [0], [1], [0, 0, 1, 1], [], []>} : vector<32x144xf32>, vector<144x128xf32>, vector<32x128xf32> -> vector<32x128xf32>
    %33 = arith.addf %27, %32 : vector<32x128xf32>
    %34 = vector.broadcast %1 : f32 to vector<32x128xf32>
    %35 = arith.mulf %33, %34 : vector<32x128xf32>
    %36 = arith.subf %7, %35 : vector<32x128xf32>
    %cst_31 = arith.constant dense<0xFF800000> : vector<32xf32>
    %37 = vector.multi_reduction <maximumf>, %36, %cst_31 [1] : vector<32x128xf32> to vector<32xf32>
    %38 = vector.shape_cast %37 : vector<32xf32> to vector<32x1xf32>
    %39 = vector.broadcast %38 : vector<32x1xf32> to vector<32x128xf32>
    %40 = arith.subf %36, %39 : vector<32x128xf32>
    %41 = math.exp %40 : vector<32x128xf32>
    %cst_32 = arith.constant dense<0.000000e+00> : vector<32x128xf32>
    %42 = tpu.matmul %41, %3, %cst_32 {dimension_numbers = #tpu.dot_dimension_numbers<[1], [0], [0], [1], [0, 0, 1, 1], [], []>} : vector<32x128xf32>, vector<128x128xf32>, vector<32x128xf32> -> vector<32x128xf32>
    %43 = arith.divf %41, %42 : vector<32x128xf32>
    %44 = vector.shape_cast %43 : vector<32x128xf32> to vector<2x16x128xf32>
    %c0_33 = arith.constant 0 : index
    %c1_34 = arith.constant 1 : index
    %c8_35 = arith.constant 8 : index
    %45 = vector.load %arg5[%c0_33, %c1_34, %c8_35] : memref<2x18x144xf32, #tpu.memory_space<vmem>>, vector<2x16x128xf32>
    tpu.vector_store %arg5[%c0_33, %c1_34, %c8_35], %44 {strides = array<i32>} : memref<2x18x144xf32, #tpu.memory_space<vmem>>, vector<2x16x128xf32>,
    %c0_36 = arith.constant 0 : index
    %c0_37 = arith.constant 0 : index
    %c0_38 = arith.constant 0 : index
    %46 = vector.load %arg5[%c0_36, %c0_37, %c0_38] : memref<2x18x144xf32, #tpu.memory_space<vmem>>, vector<2x16x144xf32>
    %47 = vector.shape_cast %46 : vector<2x16x144xf32> to vector<32x144xf32>
    %c0_39 = arith.constant 0 : index
    %c0_40 = arith.constant 0 : index
    %c0_41 = arith.constant 0 : index
    %48 = vector.load %arg1[%c0_39, %c0_40, %c0_41] : memref<3x144x128xf32, #tpu.memory_space<vmem>>, vector<1x144x128xf32>
    %49 = vector.shape_cast %48 : vector<1x144x128xf32> to vector<144x128xf32>
    %cst_42 = arith.constant dense<0.000000e+00> : vector<32x128xf32>
    %50 = tpu.matmul %47, %49, %cst_42 {dimension_numbers = #tpu.dot_dimension_numbers<[1], [0], [0], [1], [0, 0, 1, 1], [], []>} : vector<32x144xf32>, vector<144x128xf32>, vector<32x128xf32> -> vector<32x128xf32>
    %c0_43 = arith.constant 0 : index
    %c1_44 = arith.constant 1 : index
    %c0_45 = arith.constant 0 : index
    %51 = vector.load %arg5[%c0_43, %c1_44, %c0_45] : memref<2x18x144xf32, #tpu.memory_space<vmem>>, vector<2x16x144xf32>
    %52 = vector.shape_cast %51 : vector<2x16x144xf32> to vector<32x144xf32>
    %c1_46 = arith.constant 1 : index
    %c0_47 = arith.constant 0 : index
    %c0_48 = arith.constant 0 : index
    %53 = vector.load %arg1[%c1_46, %c0_47, %c0_48] : memref<3x144x128xf32, #tpu.memory_space<vmem>>, vector<1x144x128xf32>
    %54 = vector.shape_cast %53 : vector<1x144x128xf32> to vector<144x128xf32>
    %cst_49 = arith.constant dense<0.000000e+00> : vector<32x128xf32>
    %55 = tpu.matmul %52, %54, %cst_49 {dimension_numbers = #tpu.dot_dimension_numbers<[1], [0], [0], [1], [0, 0, 1, 1], [], []>} : vector<32x144xf32>, vector<144x128xf32>, vector<32x128xf32> -> vector<32x128xf32>
    %56 = arith.addf %50, %55 : vector<32x128xf32>
    %c0_50 = arith.constant 0 : index
    %c2_51 = arith.constant 2 : index
    %c0_52 = arith.constant 0 : index
    %57 = vector.load %arg5[%c0_50, %c2_51, %c0_52] : memref<2x18x144xf32, #tpu.memory_space<vmem>>, vector<2x16x144xf32>
    %58 = vector.shape_cast %57 : vector<2x16x144xf32> to vector<32x144xf32>
    %c2_53 = arith.constant 2 : index
    %c0_54 = arith.constant 0 : index
    %c0_55 = arith.constant 0 : index
    %59 = vector.load %arg1[%c2_53, %c0_54, %c0_55] : memref<3x144x128xf32, #tpu.memory_space<vmem>>, vector<1x144x128xf32>
    %60 = vector.shape_cast %59 : vector<1x144x128xf32> to vector<144x128xf32>
    %cst_56 = arith.constant dense<0.000000e+00> : vector<32x128xf32>
    %61 = tpu.matmul %58, %60, %cst_56 {dimension_numbers = #tpu.dot_dimension_numbers<[1], [0], [0], [1], [0, 0, 1, 1], [], []>} : vector<32x144xf32>, vector<144x128xf32>, vector<32x128xf32> -> vector<32x128xf32>
    %62 = arith.addf %56, %61 : vector<32x128xf32>
    %63 = vector.broadcast %1 : f32 to vector<32x128xf32>
    %64 = arith.mulf %62, %63 : vector<32x128xf32>
    %65 = arith.subf %7, %64 : vector<32x128xf32>
    %cst_57 = arith.constant dense<0xFF800000> : vector<32xf32>
    %66 = vector.multi_reduction <maximumf>, %65, %cst_57 [1] : vector<32x128xf32> to vector<32xf32>
    %67 = vector.shape_cast %66 : vector<32xf32> to vector<32x1xf32>
    %68 = vector.broadcast %67 : vector<32x1xf32> to vector<32x128xf32>
    %69 = arith.subf %65, %68 : vector<32x128xf32>
    %70 = math.exp %69 : vector<32x128xf32>
    %cst_58 = arith.constant dense<0.000000e+00> : vector<32x128xf32>
    %71 = tpu.matmul %70, %3, %cst_58 {dimension_numbers = #tpu.dot_dimension_numbers<[1], [0], [0], [1], [0, 0, 1, 1], [], []>} : vector<32x128xf32>, vector<128x128xf32>, vector<32x128xf32> -> vector<32x128xf32>
    %72 = arith.divf %70, %71 : vector<32x128xf32>
    %73 = vector.shape_cast %72 : vector<32x128xf32> to vector<2x16x128xf32>
    %c0_59 = arith.constant 0 : index
    %c1_60 = arith.constant 1 : index
    %c8_61 = arith.constant 8 : index
    %74 = vector.load %arg5[%c0_59, %c1_60, %c8_61] : memref<2x18x144xf32, #tpu.memory_space<vmem>>, vector<2x16x128xf32>
    tpu.vector_store %arg5[%c0_59, %c1_60, %c8_61], %73 {strides = array<i32>} : memref<2x18x144xf32, #tpu.memory_space<vmem>>, vector<2x16x128xf32>,
    %c0_62 = arith.constant 0 : index
    %c0_63 = arith.constant 0 : index
    %c0_64 = arith.constant 0 : index
    %75 = vector.load %arg5[%c0_62, %c0_63, %c0_64] : memref<2x18x144xf32, #tpu.memory_space<vmem>>, vector<2x16x144xf32>
    %76 = vector.shape_cast %75 : vector<2x16x144xf32> to vector<32x144xf32>
    %c0_65 = arith.constant 0 : index
    %c0_66 = arith.constant 0 : index
    %c0_67 = arith.constant 0 : index
    %77 = vector.load %arg1[%c0_65, %c0_66, %c0_67] : memref<3x144x128xf32, #tpu.memory_space<vmem>>, vector<1x144x128xf32>
    %78 = vector.shape_cast %77 : vector<1x144x128xf32> to vector<144x128xf32>
    %cst_68 = arith.constant dense<0.000000e+00> : vector<32x128xf32>
    %79 = tpu.matmul %76, %78, %cst_68 {dimension_numbers = #tpu.dot_dimension_numbers<[1], [0], [0], [1], [0, 0, 1, 1], [], []>} : vector<32x144xf32>, vector<144x128xf32>, vector<32x128xf32> -> vector<32x128xf32>
    %c0_69 = arith.constant 0 : index
    %c1_70 = arith.constant 1 : index
    %c0_71 = arith.constant 0 : index
    %80 = vector.load %arg5[%c0_69, %c1_70, %c0_71] : memref<2x18x144xf32, #tpu.memory_space<vmem>>, vector<2x16x144xf32>
    %81 = vector.shape_cast %80 : vector<2x16x144xf32> to vector<32x144xf32>
    %c1_72 = arith.constant 1 : index
    %c0_73 = arith.constant 0 : index
    %c0_74 = arith.constant 0 : index
    %82 = vector.load %arg1[%c1_72, %c0_73, %c0_74] : memref<3x144x128xf32, #tpu.memory_space<vmem>>, vector<1x144x128xf32>
    %83 = vector.shape_cast %82 : vector<1x144x128xf32> to vector<144x128xf32>
    %cst_75 = arith.constant dense<0.000000e+00> : vector<32x128xf32>
    %84 = tpu.matmul %81, %83, %cst_75 {dimension_numbers = #tpu.dot_dimension_numbers<[1], [0], [0], [1], [0, 0, 1, 1], [], []>} : vector<32x144xf32>, vector<144x128xf32>, vector<32x128xf32> -> vector<32x128xf32>
    %85 = arith.addf %79, %84 : vector<32x128xf32>
    %c0_76 = arith.constant 0 : index
    %c2_77 = arith.constant 2 : index
    %c0_78 = arith.constant 0 : index
    %86 = vector.load %arg5[%c0_76, %c2_77, %c0_78] : memref<2x18x144xf32, #tpu.memory_space<vmem>>, vector<2x16x144xf32>
    %87 = vector.shape_cast %86 : vector<2x16x144xf32> to vector<32x144xf32>
    %c2_79 = arith.constant 2 : index
    %c0_80 = arith.constant 0 : index
    %c0_81 = arith.constant 0 : index
    %88 = vector.load %arg1[%c2_79, %c0_80, %c0_81] : memref<3x144x128xf32, #tpu.memory_space<vmem>>, vector<1x144x128xf32>
    %89 = vector.shape_cast %88 : vector<1x144x128xf32> to vector<144x128xf32>
    %cst_82 = arith.constant dense<0.000000e+00> : vector<32x128xf32>
    %90 = tpu.matmul %87, %89, %cst_82 {dimension_numbers = #tpu.dot_dimension_numbers<[1], [0], [0], [1], [0, 0, 1, 1], [], []>} : vector<32x144xf32>, vector<144x128xf32>, vector<32x128xf32> -> vector<32x128xf32>
    %91 = arith.addf %85, %90 : vector<32x128xf32>
    %92 = vector.broadcast %1 : f32 to vector<32x128xf32>
    %93 = arith.mulf %91, %92 : vector<32x128xf32>
    %94 = arith.subf %7, %93 : vector<32x128xf32>
    %cst_83 = arith.constant dense<0xFF800000> : vector<32xf32>
    %95 = vector.multi_reduction <maximumf>, %94, %cst_83 [1] : vector<32x128xf32> to vector<32xf32>
    %96 = vector.shape_cast %95 : vector<32xf32> to vector<32x1xf32>
    %97 = vector.broadcast %96 : vector<32x1xf32> to vector<32x128xf32>
    %98 = arith.subf %94, %97 : vector<32x128xf32>
    %99 = math.exp %98 : vector<32x128xf32>
    %cst_84 = arith.constant dense<0.000000e+00> : vector<32x128xf32>
    %100 = tpu.matmul %99, %3, %cst_84 {dimension_numbers = #tpu.dot_dimension_numbers<[1], [0], [0], [1], [0, 0, 1, 1], [], []>} : vector<32x128xf32>, vector<128x128xf32>, vector<32x128xf32> -> vector<32x128xf32>
    %101 = arith.divf %99, %100 : vector<32x128xf32>
    %102 = vector.shape_cast %101 : vector<32x128xf32> to vector<2x16x128xf32>
    %c0_85 = arith.constant 0 : index
    %c1_86 = arith.constant 1 : index
    %c8_87 = arith.constant 8 : index
    %103 = vector.load %arg5[%c0_85, %c1_86, %c8_87] : memref<2x18x144xf32, #tpu.memory_space<vmem>>, vector<2x16x128xf32>
    tpu.vector_store %arg5[%c0_85, %c1_86, %c8_87], %102 {strides = array<i32>} : memref<2x18x144xf32, #tpu.memory_space<vmem>>, vector<2x16x128xf32>,
    %c0_88 = arith.constant 0 : index
    %c0_89 = arith.constant 0 : index
    %c0_90 = arith.constant 0 : index
    %104 = vector.load %arg5[%c0_88, %c0_89, %c0_90] : memref<2x18x144xf32, #tpu.memory_space<vmem>>, vector<2x16x144xf32>
    %105 = vector.shape_cast %104 : vector<2x16x144xf32> to vector<32x144xf32>
    %c0_91 = arith.constant 0 : index
    %c0_92 = arith.constant 0 : index
    %c0_93 = arith.constant 0 : index
    %106 = vector.load %arg1[%c0_91, %c0_92, %c0_93] : memref<3x144x128xf32, #tpu.memory_space<vmem>>, vector<1x144x128xf32>
    %107 = vector.shape_cast %106 : vector<1x144x128xf32> to vector<144x128xf32>
    %cst_94 = arith.constant dense<0.000000e+00> : vector<32x128xf32>
    %108 = tpu.matmul %105, %107, %cst_94 {dimension_numbers = #tpu.dot_dimension_numbers<[1], [0], [0], [1], [0, 0, 1, 1], [], []>} : vector<32x144xf32>, vector<144x128xf32>, vector<32x128xf32> -> vector<32x128xf32>
    %c0_95 = arith.constant 0 : index
    %c1_96 = arith.constant 1 : index
    %c0_97 = arith.constant 0 : index
    %109 = vector.load %arg5[%c0_95, %c1_96, %c0_97] : memref<2x18x144xf32, #tpu.memory_space<vmem>>, vector<2x16x144xf32>
    %110 = vector.shape_cast %109 : vector<2x16x144xf32> to vector<32x144xf32>
    %c1_98 = arith.constant 1 : index
    %c0_99 = arith.constant 0 : index
    %c0_100 = arith.constant 0 : index
    %111 = vector.load %arg1[%c1_98, %c0_99, %c0_100] : memref<3x144x128xf32, #tpu.memory_space<vmem>>, vector<1x144x128xf32>
    %112 = vector.shape_cast %111 : vector<1x144x128xf32> to vector<144x128xf32>
    %cst_101 = arith.constant dense<0.000000e+00> : vector<32x128xf32>
    %113 = tpu.matmul %110, %112, %cst_101 {dimension_numbers = #tpu.dot_dimension_numbers<[1], [0], [0], [1], [0, 0, 1, 1], [], []>} : vector<32x144xf32>, vector<144x128xf32>, vector<32x128xf32> -> vector<32x128xf32>
    %114 = arith.addf %108, %113 : vector<32x128xf32>
    %c0_102 = arith.constant 0 : index
    %c2_103 = arith.constant 2 : index
    %c0_104 = arith.constant 0 : index
    %115 = vector.load %arg5[%c0_102, %c2_103, %c0_104] : memref<2x18x144xf32, #tpu.memory_space<vmem>>, vector<2x16x144xf32>
    %116 = vector.shape_cast %115 : vector<2x16x144xf32> to vector<32x144xf32>
    %c2_105 = arith.constant 2 : index
    %c0_106 = arith.constant 0 : index
    %c0_107 = arith.constant 0 : index
    %117 = vector.load %arg1[%c2_105, %c0_106, %c0_107] : memref<3x144x128xf32, #tpu.memory_space<vmem>>, vector<1x144x128xf32>
    %118 = vector.shape_cast %117 : vector<1x144x128xf32> to vector<144x128xf32>
    %cst_108 = arith.constant dense<0.000000e+00> : vector<32x128xf32>
    %119 = tpu.matmul %116, %118, %cst_108 {dimension_numbers = #tpu.dot_dimension_numbers<[1], [0], [0], [1], [0, 0, 1, 1], [], []>} : vector<32x144xf32>, vector<144x128xf32>, vector<32x128xf32> -> vector<32x128xf32>
    %120 = arith.addf %114, %119 : vector<32x128xf32>
    %121 = vector.broadcast %1 : f32 to vector<32x128xf32>
    %122 = arith.mulf %120, %121 : vector<32x128xf32>
    %123 = arith.subf %7, %122 : vector<32x128xf32>
    %cst_109 = arith.constant dense<0xFF800000> : vector<32xf32>
    %124 = vector.multi_reduction <maximumf>, %123, %cst_109 [1] : vector<32x128xf32> to vector<32xf32>
    %125 = vector.shape_cast %124 : vector<32xf32> to vector<32x1xf32>
    %126 = vector.broadcast %125 : vector<32x1xf32> to vector<32x128xf32>
    %127 = arith.subf %123, %126 : vector<32x128xf32>
    %128 = math.exp %127 : vector<32x128xf32>
    %cst_110 = arith.constant dense<0.000000e+00> : vector<32x128xf32>
    %129 = tpu.matmul %128, %3, %cst_110 {dimension_numbers = #tpu.dot_dimension_numbers<[1], [0], [0], [1], [0, 0, 1, 1], [], []>} : vector<32x128xf32>, vector<128x128xf32>, vector<32x128xf32> -> vector<32x128xf32>
    %130 = arith.divf %128, %129 : vector<32x128xf32>
    %131 = vector.shape_cast %130 : vector<32x128xf32> to vector<2x16x128xf32>
    %c0_111 = arith.constant 0 : index
    %c1_112 = arith.constant 1 : index
    %c8_113 = arith.constant 8 : index
    %132 = vector.load %arg5[%c0_111, %c1_112, %c8_113] : memref<2x18x144xf32, #tpu.memory_space<vmem>>, vector<2x16x128xf32>
    tpu.vector_store %arg5[%c0_111, %c1_112, %c8_113], %131 {strides = array<i32>} : memref<2x18x144xf32, #tpu.memory_space<vmem>>, vector<2x16x128xf32>,
    %c0_114 = arith.constant 0 : index
    %c0_115 = arith.constant 0 : index
    %c0_116 = arith.constant 0 : index
    %133 = vector.load %arg5[%c0_114, %c0_115, %c0_116] : memref<2x18x144xf32, #tpu.memory_space<vmem>>, vector<2x16x144xf32>
    %134 = vector.shape_cast %133 : vector<2x16x144xf32> to vector<32x144xf32>
    %c0_117 = arith.constant 0 : index
    %c0_118 = arith.constant 0 : index
    %c0_119 = arith.constant 0 : index
    %135 = vector.load %arg1[%c0_117, %c0_118, %c0_119] : memref<3x144x128xf32, #tpu.memory_space<vmem>>, vector<1x144x128xf32>
    %136 = vector.shape_cast %135 : vector<1x144x128xf32> to vector<144x128xf32>
    %cst_120 = arith.constant dense<0.000000e+00> : vector<32x128xf32>
    %137 = tpu.matmul %134, %136, %cst_120 {dimension_numbers = #tpu.dot_dimension_numbers<[1], [0], [0], [1], [0, 0, 1, 1], [], []>} : vector<32x144xf32>, vector<144x128xf32>, vector<32x128xf32> -> vector<32x128xf32>
    %c0_121 = arith.constant 0 : index
    %c1_122 = arith.constant 1 : index
    %c0_123 = arith.constant 0 : index
    %138 = vector.load %arg5[%c0_121, %c1_122, %c0_123] : memref<2x18x144xf32, #tpu.memory_space<vmem>>, vector<2x16x144xf32>
    %139 = vector.shape_cast %138 : vector<2x16x144xf32> to vector<32x144xf32>
    %c1_124 = arith.constant 1 : index
    %c0_125 = arith.constant 0 : index
    %c0_126 = arith.constant 0 : index
    %140 = vector.load %arg1[%c1_124, %c0_125, %c0_126] : memref<3x144x128xf32, #tpu.memory_space<vmem>>, vector<1x144x128xf32>
    %141 = vector.shape_cast %140 : vector<1x144x128xf32> to vector<144x128xf32>
    %cst_127 = arith.constant dense<0.000000e+00> : vector<32x128xf32>
    %142 = tpu.matmul %139, %141, %cst_127 {dimension_numbers = #tpu.dot_dimension_numbers<[1], [0], [0], [1], [0, 0, 1, 1], [], []>} : vector<32x144xf32>, vector<144x128xf32>, vector<32x128xf32> -> vector<32x128xf32>
    %143 = arith.addf %137, %142 : vector<32x128xf32>
    %c0_128 = arith.constant 0 : index
    %c2_129 = arith.constant 2 : index
    %c0_130 = arith.constant 0 : index
    %144 = vector.load %arg5[%c0_128, %c2_129, %c0_130] : memref<2x18x144xf32, #tpu.memory_space<vmem>>, vector<2x16x144xf32>
    %145 = vector.shape_cast %144 : vector<2x16x144xf32> to vector<32x144xf32>
    %c2_131 = arith.constant 2 : index
    %c0_132 = arith.constant 0 : index
    %c0_133 = arith.constant 0 : index
    %146 = vector.load %arg1[%c2_131, %c0_132, %c0_133] : memref<3x144x128xf32, #tpu.memory_space<vmem>>, vector<1x144x128xf32>
    %147 = vector.shape_cast %146 : vector<1x144x128xf32> to vector<144x128xf32>
    %cst_134 = arith.constant dense<0.000000e+00> : vector<32x128xf32>
    %148 = tpu.matmul %145, %147, %cst_134 {dimension_numbers = #tpu.dot_dimension_numbers<[1], [0], [0], [1], [0, 0, 1, 1], [], []>} : vector<32x144xf32>, vector<144x128xf32>, vector<32x128xf32> -> vector<32x128xf32>
    %149 = arith.addf %143, %148 : vector<32x128xf32>
    %150 = vector.broadcast %1 : f32 to vector<32x128xf32>
    %151 = arith.mulf %149, %150 : vector<32x128xf32>
    %152 = arith.subf %7, %151 : vector<32x128xf32>
    %c0_135 = arith.constant 0 : index
    %c0_136 = arith.constant 0 : index
    %153 = vector.load %arg4[%c0_135, %c0_136] : memref<32x128xf32, #tpu.memory_space<vmem>>, vector<32x128xf32>
    tpu.vector_store %arg4[%c0_135, %c0_136], %152 {strides = array<i32>} : memref<32x128xf32, #tpu.memory_space<vmem>>, vector<32x128xf32>,
    return
  }
}

</mosaic_0001>

<bundles_post_ra>
// kernel: tpu_custom_call.1
= control target key start
LH: loop header
LB: loop body
LE: loop exit
PB: predicated region body
PF: predicated region fallthrough
CT: control target
= control target key end

     0   :  { %9 = vsyncpa [#allocation4], 0  ;;  %s5318_s0 = inlined_call_operand.hbm [shape: f32[32,128], index: 0, kind: input, shape index: {}]   ;;  %s5319_s1 = inlined_call_operand.hbm [shape: f32[3,144,128], index: 1, kind: input, shape index: {}]   ;;  %s5320_s2 = inlined_call_operand.hbm [shape: f32[128,128], index: 2, kind: input, shape index: {}]   ;;  %s5321_s3 = inlined_call_operand.vmem [shape: f32[2], index: 3, kind: input, shape index: {}]   ;;  %s5322_s4 = inlined_call_operand.hbm [shape: f32[32,128], index: 4, kind: output, shape index: {}]  }
   0x1   :  { %10 = vsyncpa [#allocation8], 0 }
   0x2   :  { %11 = vsyncpa [#allocation6], 0 }
   0x3   :  { %12 = vsyncpa [#allocation5], 0  ;;  %s4297_s15 = smov [#allocation7]   ;;  %s4298_s17 = smov [#allocation3]  }
   0x4   :  { %s30_s16 = sshll.u32 %s4297_s15, 4  ;;  %s18_s18 = sshll.u32 %s4298_s17, 4  ;;  %s31_s16 = int_to_ptr.vmem [resolvable:$true] %s30_s16  ;;  %s4331_s18 = int_to_ptr.vmem [resolvable:$true] %s18_s18 }
   0x5   :  { %s4189_s21 = scalar_lea.hbm %s5319_s1, 6912 }
   0x6   :  { %p4190_p0 = scmp.ne.s32.totalorder %s5319_s1, %s4189_s21  ;;  %p4193_p1 = scmp.lt.u32.totalorder %s4189_s21, %s5319_s1 }
   0x8   :  { %p4195_p2 = pnand %p4193_p1, %p4190_p0 }
   0xa   :  { %4198 = shalt.err (!%p4195_p2)
}
   0xb   :  { %s4199_s26 = scalar_lea.vmem %s31_s16, 6912  ;;  %p4204_p4 = scmp.lt.s32.totalorder %s31_s16, %s31_s16 }
   0xc   :  { %p4200_p3 = scmp.ne.s32.totalorder %s31_s16, %s4199_s26  ;;  %p4205_p5 = scmp.lt.s32.totalorder %s4199_s26, %s4199_s26 }
   0xe   :  { %p4206_p6 = por %p4205_p5, %p4204_p4 }
  0x10   :  { %p4207_p7 = pnand %p4206_p6, %p4200_p3 }
  0x12   :  { %4210 = shalt.err (!%p4207_p7)
}
  0x13   :  { %s4299_s27 = smov 128   ;;  %s4300_s28 = smov 8  }
  0x14   :  { %36 = dma.hbm_to_vmem [thread:$0]  %s5319_s1, 6912, %s31_s16, [#allocation8], %s4299_s27, %s4299_s27, %s4300_s28  }
  0x15   :  { %s4211_s7 = scalar_lea.hbm %s5318_s0, 512 }
  0x16   :  { %p4212_p8 = scmp.ne.s32.totalorder %s5318_s0, %s4211_s7  ;;  %p4215_p9 = scmp.lt.u32.totalorder %s4211_s7, %s5318_s0 }
  0x18   :  { %p4217_p10 = pnand %p4215_p9, %p4212_p8 }
  0x1a   :  { %4220 = shalt.err (!%p4217_p10)
}
  0x1b   :  { %s4221_s12 = scalar_lea.vmem %s4331_s18, 512  ;;  %p4226_p12 = scmp.lt.s32.totalorder %s4331_s18, %s4331_s18 }
  0x1c   :  { %p4222_p11 = scmp.ne.s32.totalorder %s4331_s18, %s4221_s12  ;;  %p4227_p13 = scmp.lt.s32.totalorder %s4221_s12, %s4221_s12 }
  0x1e   :  { %p4228_p0 = por %p4227_p13, %p4226_p12 }
  0x20   :  { %p4229_p1 = pnand %p4228_p0, %p4222_p11 }
  0x22   :  { %4232 = shalt.err (!%p4229_p1)
}
  0x23   :  { %24 = dma.hbm_to_vmem [thread:$0]  %s5318_s0, 512, %s4331_s18, [#allocation4], %s4299_s27, %s4299_s27, %s4300_s28  }
  0x24   :  { %s55_s16 = sshll.u32 %s5321_s3, 4  ;;  %s4301_s17 = smov [#allocation9]   ;;  %s56_s16 = int_to_ptr.vmem [resolvable:$true] %s55_s16 }
  0x25   :  { %s42_s19 = sshll.u32 %s4301_s17, 4  ;;  %s4233_s22 = scalar_lea.hbm %s5320_s2, 2048  ;;  %s43_s19 = int_to_ptr.vmem [resolvable:$true] %s42_s19 }
  0x26   :  { %p4234_p2 = scmp.ne.s32.totalorder %s5320_s2, %s4233_s22  ;;  %p4237_p3 = scmp.lt.u32.totalorder %s4233_s22, %s5320_s2 }
  0x28   :  { %p4239_p4 = pnand %p4237_p3, %p4234_p2 }
  0x2a   :  { %4242 = shalt.err (!%p4239_p4)
}
  0x2b   :  { %s4243_s0 = scalar_lea.vmem %s43_s19, 2048  ;;  %p4248_p6 = scmp.lt.s32.totalorder %s43_s19, %s43_s19 }
  0x2c   :  { %p4244_p5 = scmp.ne.s32.totalorder %s43_s19, %s4243_s0  ;;  %p4249_p7 = scmp.lt.s32.totalorder %s4243_s0, %s4243_s0 }
  0x2e   :  { %p4250_p8 = por %p4249_p7, %p4248_p6 }
  0x30   :  { %p4251_p9 = pnand %p4250_p8, %p4244_p5 }
  0x32   :  { %4254 = shalt.err (!%p4251_p9)
}
  0x33   :  { %48 = dma.hbm_to_vmem [thread:$0]  %s5320_s2, 2048, %s43_s19, [#allocation8], %s4299_s27, %s4299_s27, %s4300_s28  }
  0x34   :  { %s4255_s29 = scalar_lea.vmem %s56_s16, 16  ;;  %p4260_p11 = scmp.lt.s32.totalorder %s56_s16, %s56_s16 }
  0x35   :  { %p4256_p10 = scmp.ne.s32.totalorder %s56_s16, %s4255_s29  ;;  %p4261_p12 = scmp.lt.s32.totalorder %s4255_s29, %s4255_s29 }
  0x37   :  { %p4262_p13 = por %p4261_p12, %p4260_p11 }
  0x39   :  { %p4263_p0 = pnand %p4262_p13, %p4256_p10 }
  0x3b   :  { %4266 = shalt.err (!%p4263_p0)
}
  0x3c   :  { %s4302_s30 = smov [#allocation10]  }
  0x3d   :  { %58 = dma.vmem_to_smem %s56_s16, 16, %s4302_s30, [#allocation6]  }
  0x3e   :  { %4289 = dma.done.wait [#allocation4], 512  }
  0x3f   :  { %4290 = vsyncadd [#allocation4], 4294966784 }
  0x40   :  { %4291 = dma.done.wait [#allocation8], 8960  }
  0x41   :  { %4292 = vsyncadd [#allocation8], 4294958336 }
  0x42   :  { %4293 = dma.done.wait [#allocation6], 16  }
  0x43   :  { %4294 = vsyncadd [#allocation6], 4294967280 }
  0x44   :  { %71 = sfence }
  0x45   :  { %v4386_v0 = vld [vmem:[#allocation3] sm:$0xff]  ;;  %v4388_v1 = vld [vmem:[#allocation3 + $0x10] sm:$0xff]  ;;  %v4392_v2 = vld [vmem:[#allocation3 + $0x8] sm:$0xff]  ;;  %vm95_vm0 = vcmask 130048   ;;  %v4303_v47 = vmov 0.0|0.0   ;;  %v4304_v52 = vmov 0.0  }
  0x46   :  { %113 = vmax.xlane.f32.xlu0 %v4386_v0  ;;  %117 = vmax.xlane.f32.xlu1 %v4388_v1  ;;  %v78_v3 = vld [vmem:[#allocation9] sm:$0xff]  ;;  %v79_v4 = vld [vmem:[#allocation9 + $0x8] sm:$0xff]  ;;  %v80_v7 = vld [vmem:[#allocation9 + $0x10] sm:$0xff]  ;;  %94 = vst [vmem:[#allocation2] sm:$0xff] %v4304_v52  ;;  %vm100_vm1 = vcmask 123904   ;;  %vm230_vm2 = vcmask 1040384  }
  0x47   :  { %v4394_v5 = vld [vmem:[#allocation3 + $0x18] sm:$0xff]  ;;  %v4396_v6 = vpack.c.bf16 %v79_v4, %v78_v3  ;;  %v81_v8 = vld [vmem:[#allocation9 + $0x18] sm:$0xff]  ;;  %v82_v10 = vld [vmem:[#allocation9 + $0x20] sm:$0xff]  ;;  %3518 = vmatprep.subr.bf16.mxu1 %v4303_v47  ;;  %96 = vst.msk [vmem:[#allocation2 + $0x8] sm:$0xff] %vm95_vm0, %v4304_v52  ;;  %vm255_vm3 = vcmask 1047617   ;;  %vm257_vm4 = vcmask 64513  }
  0x48   :  { %v4398_v9 = vpack.c.bf16 %v81_v8, %v80_v7  ;;  %v83_v11 = vld [vmem:[#allocation9 + $0x28] sm:$0xff]  ;;  %v84_v13 = vld [vmem:[#allocation9 + $0x30] sm:$0xff]  ;;  %v85_v14 = vld [vmem:[#allocation9 + $0x38] sm:$0xff]  ;;  %97 = vst [vmem:[#allocation2 + $0x10] sm:$0xff] %v4304_v52  ;;  %vm259_vm5 = vcmask 1047616   ;;  %vm261_vm6 = vcmask 64512  }
  0x49   :  { %3460 = vmatprep.subr.bf16.mxu0 %v4396_v6  ;;  %v4405_v12 = vpack.c.bf16 %v83_v11, %v82_v10  ;;  %v4409_v15 = vpack.c.bf16 %v85_v14, %v84_v13  ;;  %v86_v16 = vld [vmem:[#allocation9 + $0x40] sm:$0xff]  ;;  %v87_v17 = vld [vmem:[#allocation9 + $0x48] sm:$0xff]  ;;  %v88_v19 = vld [vmem:[#allocation9 + $0x50] sm:$0xff]  ;;  %98 = vst.msk [vmem:[#allocation2 + $0x18] sm:$0xff] %vm95_vm0, %v4304_v52  ;;  %vm263_vm7 = vcmask 1040448   ;;  %vm265_vm8 = vcmask 57344  }
  0x4a   :  { %115 = vmax.xlane.f32.xlu0 %v4392_v2  ;;  %119 = vmax.xlane.f32.xlu1 %v4394_v5  ;;  %v4413_v18 = vpack.c.bf16 %v87_v17, %v86_v16  ;;  %v89_v20 = vld [vmem:[#allocation9 + $0x58] sm:$0xff]  ;;  %v90_v22 = vld [vmem:[#allocation9 + $0x60] sm:$0xff]  ;;  %v91_v23 = vld [vmem:[#allocation9 + $0x68] sm:$0xff]  ;;  %99 = vst [vmem:[#allocation2 + $0x20] sm:$0x3] %v4304_v52  ;;  %vm319_vm9 = vcmask 1046528  }
  0x4b   :  { %3462 = vmatpush3.bf16.msra.mxu0 %v4396_v6  ;;  %v4417_v21 = vpack.c.bf16 %v89_v20, %v88_v19  ;;  %v4421_v24 = vpack.c.bf16 %v91_v23, %v90_v22  ;;  %v92_v25 = vld [vmem:[#allocation9 + $0x70] sm:$0xff]  ;;  %v93_v26 = vld [vmem:[#allocation9 + $0x78] sm:$0xff]  ;;  %v283_v46 = vld [vmem:[#allocation7 + $0x10] sm:$0xff]  ;;  %102 = vst [vmem:[#allocation2 + $0x30] sm:$0xff] %v4304_v52  ;;  %vm567_vm10 = vcmask 1045504   ;;  %s72_s2 = sld [smem:[#allocation10]] }
  0x4c   :  { %3464 = vmatprep.subr.bf16.mxu0 %v4398_v9  ;;  %v4425_v27 = vpack.c.bf16 %v93_v26, %v92_v25  ;;  %v281_v44 = vld [vmem:[#allocation7] sm:$0xff]  ;;  %v282_v45 = vld [vmem:[#allocation7 + $0x8] sm:$0xff]  ;;  %v284_v49 = vld [vmem:[#allocation7 + $0x18] sm:$0xff]  ;;  %103 = vst.msk [vmem:[#allocation2 + $0x38] sm:$0xff] %vm95_vm0, %v4304_v52  ;;  %s3108_s5 = sld [smem:[#allocation10 + $0x1]]  ;;  %s4305_s6 = smov [#allocation11]  }
  0x4d   :  { %v4447_v48 = vpack.c.bf16 %v282_v45, %v281_v44  ;;  %v345_v50 = vld [vmem:[#allocation7 + $0x90] sm:$0xff]  ;;  %v346_v51 = vld [vmem:[#allocation7 + $0x98] sm:$0xff]  ;;  %104 = vst [vmem:[#allocation2 + $0x40] sm:$0xff] %v4304_v52  ;;  %105 = vst.msk [vmem:[#allocation2 + $0x48] sm:$0xff] %vm95_vm0, %v4304_v52  ;;  %v4467_v55 = vpack.c.bf16 %v284_v49, %v283_v46  ;;  %s3094_s7 = sshll.u32 %s4305_s6, 4  ;;  %s3095_s7 = int_to_ptr.vmem [resolvable:$true] %s3094_s7 }
  0x4e   :  { %106 = vst [vmem:[#allocation2 + $0x50] sm:$0x3] %v4304_v52  ;;  %v4464_v53 = vpack.c.bf16 %v346_v51, %v345_v50  ;;  %v347_v54 = vld [vmem:[#allocation7 + $0xa0] sm:$0xff]  ;;  %v348_v56 = vld [vmem:[#allocation7 + $0xa8] sm:$0xff]  ;;  %v349_v60 = vld [vmem:[#allocation7 + $0xb0] sm:$0xff]  ;;  %s4267_s8 = scalar_lea.vmem %s3095_s7, 512  ;;  %p4272_p2 = scmp.lt.s32.totalorder %s3095_s7, %s3095_s7 }
  0x4f   :  { %3466 = vmatpush3.bf16.msra.mxu0 %v4398_v9  ;;  %3520 = vmatpush1.bf16.msra.mxu1 %v4447_v48  ;;  %v285_v57 = vld [vmem:[#allocation7 + $0x20] sm:$0xff]  ;;  %v286_v58 = vld [vmem:[#allocation7 + $0x28] sm:$0xff]  ;;  %v4471_v59 = vpack.c.bf16 %v348_v56, %v347_v54  ;;  %v350_v61 = vld [vmem:[#allocation7 + $0xb8] sm:$0xff]  ;;  %101 = vst.msk [vmem:[#allocation2 + $0x28] sm:$0x3] %vm100_vm1, %v4304_v52  ;;  %p4268_p1 = scmp.ne.s32.totalorder %s3095_s7, %s4267_s8  ;;  %p4273_p3 = scmp.lt.s32.totalorder %s4267_s8, %s4267_s8 }
  0x50   :  { %3468 = vmatprep.subr.bf16.mxu0 %v4405_v12  ;;  %3521 = vmatprep.subr.bf16.mxu1 %v4303_v47  ;;  %v4475_v62 = vpack.c.bf16 %v286_v58, %v285_v57  ;;  %v287_v63 = vld [vmem:[#allocation7 + $0x30] sm:$0xff]  ;;  %v288_v3 = vld [vmem:[#allocation7 + $0x38] sm:$0xff]  ;;  %v4479_v4 = vpack.c.bf16 %v350_v61, %v349_v60  ;;  %v351_v7 = vld [vmem:[#allocation7 + $0xc0] sm:$0xff]  ;;  %107 = vst.msk [vmem:[#allocation2 + $0x58] sm:$0x3] %vm100_vm1, %v4304_v52 }
  0x51   :  { %v352_v8 = vld [vmem:[#allocation7 + $0xc8] sm:$0xff]  ;;  %v4483_v10 = vpack.c.bf16 %v288_v3, %v287_v63  ;;  %v289_v11 = vld [vmem:[#allocation7 + $0x40] sm:$0xff]  ;;  %v353_v16 = vld [vmem:[#allocation7 + $0xd0] sm:$0xff]  ;;  %p4274_p4 = por %p4273_p3, %p4272_p2 }
  0x52   :  { %v290_v13 = vld [vmem:[#allocation7 + $0x48] sm:$0xff]  ;;  %v4487_v14 = vpack.c.bf16 %v352_v8, %v351_v7  ;;  %v354_v17 = vld [vmem:[#allocation7 + $0xd8] sm:$0xff]  ;;  %v291_v20 = vld [vmem:[#allocation7 + $0x50] sm:$0xff] }
  0x53   :  { %3470 = vmatpush3.bf16.msra.mxu0 %v4405_v12  ;;  %3523 = vmatpush1.bf16.msra.mxu1 %v4467_v55  ;;  %v4491_v19 = vpack.c.bf16 %v290_v13, %v289_v11  ;;  %v292_v22 = vld [vmem:[#allocation7 + $0x58] sm:$0xff]  ;;  %v4495_v23 = vpack.c.bf16 %v354_v17, %v353_v16  ;;  %v355_v25 = vld [vmem:[#allocation7 + $0xe0] sm:$0xff]  ;;  %v356_v26 = vld [vmem:[#allocation7 + $0xe8] sm:$0xff]  ;;  %p4275_p5 = pnand %p4274_p4, %p4268_p1 }
  0x54   :  { %3472 = vmatprep.subr.bf16.mxu0 %v4409_v15  ;;  %3524 = vmatprep.subr.bf16.mxu1 %v4303_v47  ;;  %v297_v49 = vld [vmem:[#allocation7 + $0x80] sm:$0xff]  ;;  %v298_v50 = vld [vmem:[#allocation7 + $0x88] sm:$0xff]  ;;  %v361_v61 = vld [vmem:[#allocation7 + $0x110] sm:$0xff] }
  0x55   :  { %v4524_v51 = vpack.c.bf16 %v298_v50, %v297_v49  ;;  %v359_v54 = vld [vmem:[#allocation7 + $0x100] sm:$0xff]  ;;  %v360_v56 = vld [vmem:[#allocation7 + $0x108] sm:$0xff]  ;;  %v362_v63 = vld [vmem:[#allocation7 + $0x118] sm:$0xff] }
  0x56   :  { %v4526_v57 = vpack.c.bf16 %v360_v56, %v359_v54  ;;  %v4534_v7 = vpack.c.bf16 %v362_v63, %v361_v61  ;;  %v597_v63 = vld [vmem:[#allocation7 + $0x140] sm:$0xff] }
  0x57   :  { %3474 = vmatpush3.bf16.msra.mxu0 %v4409_v15  ;;  %3526 = vmatpush1.bf16.msra.mxu1 %v4475_v62 }
  0x58   :  { %3476 = vmatprep.subr.bf16.mxu0 %v4413_v18  ;;  %3527 = vmatprep.subr.bf16.mxu1 %v4303_v47 }
  0x5b   :  { %3478 = vmatpush3.bf16.msra.mxu0 %v4413_v18  ;;  %3529 = vmatpush1.bf16.msra.mxu1 %v4483_v10 }
  0x5c   :  { %3480 = vmatprep.subr.bf16.mxu0 %v4417_v21  ;;  %3530 = vmatprep.subr.bf16.mxu1 %v4303_v47 }
  0x5f   :  { %3482 = vmatpush3.bf16.msra.mxu0 %v4417_v21  ;;  %3532 = vmatpush1.bf16.msra.mxu1 %v4491_v19 }
  0x60   :  { %3484 = vmatprep.subr.bf16.mxu0 %v4421_v24  ;;  %3533 = vmatprep.subr.bf16.mxu1 %v4303_v47 }
  0x63   :  { %3486 = vmatpush3.bf16.msra.mxu0 %v4421_v24 }
  0x64   :  { %3488 = vmatprep.subr.bf16.mxu0 %v4425_v27 }
  0x67   :  { %3490 = vmatpush3.bf16.msra.mxu0 %v4425_v27 }
  0x68   :  { %3491 = vmatprep.subr.bf16.mxu0 %v4303_v47 }
  0xd3   :  { %v114_v28 = vpop.xlane.xlu0 %113  ;;  %v118_v29 = vpop.xlane.xlu1 %117 }
  0xd4   :  { %v121_v30 = vsub.f32 %v4386_v0, %v114_v28  ;;  %v123_v31 = vsub.f32 %v4388_v1, %v118_v29  ;;  %v4499_v28 = vpack.c.bf16 %v292_v22, %v291_v20  ;;  %v293_v29 = vld [vmem:[#allocation7 + $0x60] sm:$0xff] }
  0xd6   :  { %v125_v32 = vmul.f32 1.442695, %v121_v30  ;;  %v129_v33 = vmul.f32 1.442695, %v123_v31  ;;  %v294_v30 = vld [vmem:[#allocation7 + $0x68] sm:$0xff]  ;;  %v4503_v31 = vpack.c.bf16 %v356_v26, %v355_v25  ;;  %3535 = vmatpush1.bf16.msra.mxu1 %v4499_v28 }
  0xd7   :  { %v116_v34 = vpop.xlane.xlu0 %115  ;;  %v120_v35 = vpop.xlane.xlu1 %119  ;;  %3536 = vmatprep.subr.bf16.mxu1 %v4303_v47 }
  0xd8   :  { %4109 = vpow2.f32 %v125_v32  ;;  %v122_v36 = vsub.f32 %v4392_v2, %v116_v34  ;;  %v124_v37 = vsub.f32 %v4394_v5, %v120_v35  ;;  %v4507_v32 = vpack.c.bf16 %v294_v30, %v293_v29  ;;  %v295_v35 = vld [vmem:[#allocation7 + $0x70] sm:$0xff]  ;;  %v593_v29 = vld [vmem:[#allocation7 + $0x120] sm:$0xff]  ;;  %v594_v30 = vld [vmem:[#allocation7 + $0x128] sm:$0xff] }
  0xd9   :  { %4111 = vpow2.f32 %v129_v33 }
  0xda   :  { %v127_v38 = vmul.f32 1.442695, %v122_v36  ;;  %v131_v39 = vmul.f32 1.442695, %v124_v37  ;;  %3538 = vmatpush1.bf16.msra.mxu1 %v4507_v32  ;;  %v296_v36 = vld [vmem:[#allocation7 + $0x78] sm:$0xff] }
  0xdb   :  { %3539 = vmatprep.subr.bf16.mxu1 %v4303_v47  ;;  %v4514_v37 = vpack.c.bf16 %v296_v36, %v295_v35  ;;  %v595_v35 = vld [vmem:[#allocation7 + $0x130] sm:$0xff]  ;;  %v596_v36 = vld [vmem:[#allocation7 + $0x138] sm:$0xff] }
  0xdc   :  { %4113 = vpow2.f32 %v127_v38  ;;  %v357_v38 = vld [vmem:[#allocation7 + $0xf0] sm:$0xff]  ;;  %v4570_v61 = vpack.c.bf16 %v596_v36, %v595_v35 }
  0xdd   :  { %4115 = vpow2.f32 %v131_v39  ;;  %v358_v39 = vld [vmem:[#allocation7 + $0xf8] sm:$0xff] }
  0xde   :  { %v4516_v45 = vpack.c.bf16 %v358_v39, %v357_v38  ;;  %3541 = vmatpush1.bf16.msra.mxu1 %v4514_v37 }
  0xdf   :  { %3542 = vmatprep.subr.bf16.mxu1 %v4303_v47 }
  0xe2   :  { %v4434_v40 = vpop.eup %4109  ;;  %3544 = vmatpush1.bf16.msra.mxu1 %v4524_v51 }
  0xe3   :  { %3301 = vmatprep.mubr.f32.mxu0 %v4434_v40  ;;  %v4437_v41 = vpop.eup %4111  ;;  %3545 = vmatprep.subr.bf16.mxu1 %v4303_v47 }
  0xe6   :  { %v4439_v42 = vpop.eup %4113 }
  0xe7   :  { %3302 = vmatmul.mubr.f32.vlgmr.msra.gmra.mrb[0].mxu0 %v4439_v42  ;;  %v4442_v43 = vpop.eup %4115 }
  0xe8   :  { %3304 = vmatprep.mubr.f32.mxu0 %v4437_v41  ;;  %3493 = vmatpush1.bf16.msra.mxu0 %v4464_v53 }
  0xe9   :  { %3494 = vmatprep.subr.bf16.mxu0 %v4303_v47 }
  0xeb   :  { %3305 = vmatmul.mubr.f32.gmra.mrb[2].mxu0 %v4442_v43 }
  0xec   :  { %3496 = vmatpush1.bf16.msra.mxu0 %v4471_v59 }
  0xed   :  { %3497 = vmatprep.subr.bf16.mxu0 %v4303_v47 }
  0xf0   :  { %3499 = vmatpush1.bf16.msra.mxu0 %v4479_v4 }
  0xf1   :  { %3500 = vmatprep.subr.bf16.mxu0 %v4303_v47 }
  0xf4   :  { %3502 = vmatpush1.bf16.msra.mxu0 %v4487_v14 }
  0xf5   :  { %3503 = vmatprep.subr.bf16.mxu0 %v4303_v47 }
  0xf8   :  { %3505 = vmatpush1.bf16.msra.mxu0 %v4495_v23 }
  0xf9   :  { %3506 = vmatprep.subr.bf16.mxu0 %v4303_v47 }
  0xfc   :  { %3508 = vmatpush1.bf16.msra.mxu0 %v4503_v31 }
  0xfd   :  { %3509 = vmatprep.subr.bf16.mxu0 %v4303_v47 }
 0x100   :  { %3511 = vmatpush1.bf16.msra.mxu0 %v4516_v45 }
 0x101   :  { %3512 = vmatprep.subr.bf16.mxu0 %v4303_v47 }
 0x104   :  { %3514 = vmatpush1.bf16.msra.mxu0 %v4526_v57 }
 0x105   :  { %3515 = vmatprep.subr.bf16.mxu0 %v4303_v47 }
 0x108   :  { %3517 = vmatpush1.bf16.msra.mxu0 %v4534_v7 }
 0x109   :  { %3573 = vmatprep.subr.bf16.mxu0 %v4396_v6 }
 0x1ba   :  { %v3303_v33 = vpop.f32.mrb[0].mxu0 }
 0x1bb   :  { %4117 = vrcp.f32 %v3303_v33  ;;  %v199_v34 = vpop.f32.mrb[1].mxu0 }
 0x1bc   :  { %4119 = vrcp.f32 %v199_v34  ;;  %v4556_v34 = vpack.c.bf16 %v594_v30, %v593_v29  ;;  %v599_v29 = vld [vmem:[#allocation7 + $0x150] sm:$0xff]  ;;  %v600_v30 = vld [vmem:[#allocation7 + $0x158] sm:$0xff] }
 0x1be   :  { %v3306_v44 = vpop.f32.mrb[2].mxu0 }
 0x1bf   :  { %4121 = vrcp.f32 %v3306_v44  ;;  %v209_v46 = vpop.f32.mrb[3].mxu0 }
 0x1c0   :  { %4123 = vrcp.f32 %v209_v46 }
 0x1c5   :  { %v4118_v58 = vpop.eup %4117 }
 0x1c6   :  { %v4120_v52 = vpop.eup %4119  ;;  %v221_v60 = vmul.f32 %v4118_v58, %v4439_v42 }
 0x1c7   :  { %v219_v3 = vmul.f32 %v4120_v52, %v4434_v40 }
 0x1c8   :  { %v232_v8 = vrot.slane %v221_v60, 7 }
 0x1c9   :  { %v4122_v11 = vpop.eup %4121  ;;  %v231_v13 = vrot.slane %v219_v3, 7 }
 0x1ca   :  { %v4124_v16 = vpop.eup %4123  ;;  %v225_v17 = vmul.f32 %v4122_v11, %v4442_v43 }
 0x1cb   :  { %237 = vrot.lane.b32.xlu0 %v231_v13, %s4300_s28  ;;  %v233_v42 = vsel %vm230_vm2, %v231_v13, %v232_v8  ;;  %v223_v20 = vmul.f32 %v4124_v16, %v4437_v41  ;;  %v598_v16 = vld [vmem:[#allocation7 + $0x148] sm:$0xff] }
 0x1cc   :  { %239 = vrot.lane.b32.xlu1 %v233_v42, %s4300_s28  ;;  %v235_v40 = vrot.slane %v225_v17, 7 }
 0x1cd   :  { %v234_v22 = vrot.slane %v223_v20, 7 }
 0x1cf   :  { %241 = vrot.lane.b32.xlu0 %v232_v8, %s4300_s28  ;;  %v236_v25 = vsel %vm230_vm2, %v234_v22, %v235_v40 }
 0x1d0   :  { %243 = vrot.lane.b32.xlu1 %v234_v22, %s4300_s28 }
 0x1d4   :  { %245 = vrot.lane.b32.xlu1 %v236_v25, %s4300_s28 }
 0x1d8   :  { %247 = vrot.lane.b32.xlu1 %v235_v40, %s4300_s28 }
 0x23d   :  { %v238_v43 = vpop.permute.xlu0 %237 }
 0x23e   :  { %256 = vst.msk [vmem:[#allocation2] sm:$0xfe] %vm255_vm3, %v238_v43  ;;  %v240_v41 = vpop.permute.xlu1 %239 }
 0x23f   :  { %258 = vst.msk [vmem:[#allocation2 + $0x8] sm:$0xfe] %vm257_vm4, %v238_v43  ;;  %v4582_v43 = vpack.c.bf16 %v598_v16, %v597_v63 }
 0x240   :  { %260 = vst.msk [vmem:[#allocation2 + $0x10] sm:$0xff] %vm259_vm5, %v240_v41 }
 0x241   :  { %262 = vst.msk [vmem:[#allocation2 + $0x18] sm:$0xff] %vm261_vm6, %v240_v41  ;;  %v242_v26 = vpop.permute.xlu0 %241 }
 0x242   :  { %264 = vst.msk [vmem:[#allocation2 + $0x20] sm:$0x1] %vm263_vm7, %v242_v26  ;;  %v244_v33 = vpop.permute.xlu1 %243 }
 0x243   :  { %266 = vst.msk [vmem:[#allocation2 + $0x28] sm:$0x1] %vm265_vm8, %v242_v26 }
 0x244   :  { %267 = vst.msk [vmem:[#allocation2 + $0x30] sm:$0xfe] %vm255_vm3, %v244_v33 }
 0x245   :  { %268 = vst.msk [vmem:[#allocation2 + $0x38] sm:$0xfe] %vm257_vm4, %v244_v33  ;;  %v273_v39 = vld [vmem:[#allocation2] sm:$0xff] }
 0x246   :  { %v274_v38 = vld [vmem:[#allocation2 + $0x8] sm:$0xff]  ;;  %v246_v46 = vpop.permute.xlu1 %245  ;;  %v299_v56 = vld [vmem:[#allocation2] sm:$0xfe] }
 0x247   :  { %v300_v44 = vld [vmem:[#allocation2 + $0x8] sm:$0xfe]  ;;  %3113 = vmatprep.mubr.msk.f32.mxu1 %vm95_vm0, %v274_v38  ;;  %v4561_v54 = vld [vmem:[#allocation2 + $0x10] sm:$0xff]  ;;  %269 = vst.msk [vmem:[#allocation2 + $0x40] sm:$0xff] %vm259_vm5, %v246_v46  ;;  %v320_v52 = vrot.slane %v299_v56, 1 }
 0x248   :  { %v4559_v49 = vld [vmem:[#allocation2 + $0x18] sm:$0xff]  ;;  %v323_v50 = vrot.slane %v300_v44, 1  ;;  %270 = vst.msk [vmem:[#allocation2 + $0x48] sm:$0xff] %vm261_vm6, %v246_v46  ;;  %531 = vmatmul.mubr.f32.vlgmr.msra.gmra.mrb[0].mxu1 %v273_v39  ;;  %v321_v60 = vrot.slane %v4561_v54, 1  ;;  %v552_v22 = vld [vmem:[#allocation2 + $0x8] sm:$0xfc] }
 0x249   :  { %v324_v58 = vrot.slane %v4559_v49, 1  ;;  %3547 = vmatpush1.bf16.msra.mxu1 %v4556_v34  ;;  %3114 = vmatprep.mubr.msk.f32.mxu1 %vm95_vm0, %v4559_v49  ;;  %v301_v13 = vld [vmem:[#allocation2 + $0x20] sm:$0x1]  ;;  %v572_v33 = vrot.slane %v4559_v49, 2  ;;  %v571_v44 = vrot.slane %v552_v22, 2 }
 0x24a   :  { %3548 = vmatprep.subr.bf16.mxu1 %v4303_v47  ;;  %v322_v8 = vsel %vm319_vm9, %v320_v52, %v321_v60  ;;  %v302_v11 = vld [vmem:[#allocation2 + $0x28] sm:$0x1]  ;;  %v248_v17 = vpop.permute.xlu1 %247  ;;  %v326_v40 = vrot.slane %v301_v13, 1  ;;  %v4598_v52 = vpack.c.bf16 %v600_v30, %v599_v29  ;;  %v605_v29 = vld [vmem:[#allocation7 + $0x180] sm:$0xff] }
 0x24b   :  { %v325_v3 = vsel %vm319_vm9, %v323_v50, %v324_v58  ;;  %v328_v20 = vrot.slane %v302_v11, 1  ;;  %271 = vst.msk [vmem:[#allocation2 + $0x50] sm:$0x1] %vm263_vm7, %v248_v17  ;;  %v303_v26 = vld [vmem:[#allocation2 + $0x30] sm:$0xfe]  ;;  %v573_v16 = vsel %vm567_vm10, %v571_v44, %v572_v33  ;;  %v606_v30 = vld [vmem:[#allocation7 + $0x188] sm:$0xff] }
 0x24c   :  { %3109 = vmatprep.mubr.msk.f32.mxu0 %vm95_vm0, %v325_v3  ;;  %v278_v42 = vld [vmem:[#allocation2 + $0x38] sm:$0xff]  ;;  %272 = vst.msk [vmem:[#allocation2 + $0x58] sm:$0x1] %vm265_vm8, %v248_v17  ;;  %536 = vmatmul.mubr.f32.gmra.mrb[2].mxu1 %v4561_v54  ;;  %v327_v35 = vsel %vm319_vm9, %v321_v60, %v326_v40  ;;  %v277_v36 = vld [vmem:[#allocation2 + $0x30] sm:$0xff]  ;;  %v330_v56 = vrot.slane %v303_v26, 1  ;;  %v601_v3 = vld [vmem:[#allocation7 + $0x160] sm:$0xff] }
 0x24d   :  { %436 = vmatmul.mubr.f32.vlgmr.msra.gmra.mrb[4].mxu0 %v322_v8  ;;  %3550 = vmatpush1.bf16.msra.mxu1 %v4570_v61  ;;  %v329_v25 = vsel %vm319_vm9, %v324_v58, %v328_v20  ;;  %v304_v41 = vld [vmem:[#allocation2 + $0x38] sm:$0xfe]  ;;  %v602_v8 = vld [vmem:[#allocation7 + $0x168] sm:$0xff] }
 0x24e   :  { %3115 = vmatprep.mubr.msk.f32.mxu1 %vm95_vm0, %v278_v42  ;;  %3110 = vmatprep.mubr.msk.f32.mxu0 %vm95_vm0, %v329_v25  ;;  %v4590_v39 = vld [vmem:[#allocation2 + $0x40] sm:$0xff]  ;;  %v333_v50 = vrot.slane %v304_v41, 1  ;;  %v4612_v20 = vpack.c.bf16 %v602_v8, %v601_v3  ;;  %v603_v25 = vld [vmem:[#allocation7 + $0x170] sm:$0xff]  ;;  %v604_v41 = vld [vmem:[#allocation7 + $0x178] sm:$0xff]  ;;  %v569_v8 = vrot.slane %v4561_v54, 2 }
 0x24f   :  { %3551 = vmatprep.subr.bf16.mxu1 %v4303_v47  ;;  %v4588_v38 = vld [vmem:[#allocation2 + $0x48] sm:$0xff]  ;;  %3575 = vmatpush3.bf16.msra.mxu0 %v4396_v6  ;;  %v331_v58 = vrot.slane %v4590_v39, 1  ;;  %v4622_v26 = vpack.c.bf16 %v604_v41, %v603_v25  ;;  %v608_v44 = vld [vmem:[#allocation7 + $0x198] sm:$0xff]  ;;  %v555_v41 = vld [vmem:[#allocation2 + $0x30] sm:$0xfc] }
 0x250   :  { %541 = vmatmul.mubr.f32.gmra.mrb[4].mxu1 %v277_v36  ;;  %v334_v46 = vrot.slane %v4588_v38, 1  ;;  %3577 = vmatprep.subr.bf16.mxu0 %v4398_v9  ;;  %v607_v36 = vld [vmem:[#allocation7 + $0x190] sm:$0xff] }
 0x251   :  { %441 = vmatmul.mubr.f32.gmra.mrb[6].mxu0 %v327_v35  ;;  %3553 = vmatpush1.bf16.msra.mxu1 %v4582_v43  ;;  %v332_v63 = vsel %vm319_vm9, %v330_v56, %v331_v58  ;;  %v4628_v35 = vpack.c.bf16 %v606_v30, %v605_v29  ;;  %v610_v56 = vld [vmem:[#allocation7 + $0x1a8] sm:$0xff] }
 0x252   :  { %3116 = vmatprep.mubr.msk.f32.mxu1 %vm95_vm0, %v4588_v38  ;;  %v335_v60 = vsel %vm319_vm9, %v333_v50, %v334_v46  ;;  %3554 = vmatprep.subr.bf16.mxu1 %v4303_v47  ;;  %v305_v13 = vld [vmem:[#allocation2 + $0x50] sm:$0x1]  ;;  %v609_v50 = vld [vmem:[#allocation7 + $0x1a0] sm:$0xff] }
 0x253   :  { %3111 = vmatprep.mubr.msk.f32.mxu0 %vm95_vm0, %v335_v60  ;;  %v306_v11 = vld [vmem:[#allocation2 + $0x58] sm:$0x1]  ;;  %3579 = vmatpush3.bf16.msra.mxu0 %v4398_v9  ;;  %v336_v42 = vrot.slane %v305_v13, 1  ;;  %v4640_v60 = vpack.c.bf16 %v610_v56, %v609_v50  ;;  %v553_v13 = vld [vmem:[#allocation2 + $0x20] sm:$0x3] }
 0x254   :  { %546 = vmatmul.mubr.f32.gmra.mrb[6].mxu1 %v4590_v39  ;;  %v338_v17 = vrot.slane %v306_v11, 1  ;;  %3581 = vmatprep.subr.bf16.mxu0 %v4405_v12 }
 0x255   :  { %446 = vmatmul.mubr.f32.gmra.mrb[8].mxu0 %v332_v63  ;;  %3556 = vmatpush1.bf16.msra.mxu1 %v4598_v52  ;;  %v337_v22 = vsel %vm319_vm9, %v331_v58, %v336_v42  ;;  %v551_v58 = vld [vmem:[#allocation2] sm:$0xfc]  ;;  %v554_v63 = vld [vmem:[#allocation2 + $0x28] sm:$0x3]  ;;  %v556_v42 = vld [vmem:[#allocation2 + $0x38] sm:$0xfc] }
 0x256   :  { %3117 = vmatprep.mubr.msk.f32.mxu1 %vm95_vm0, %v573_v16  ;;  %v339_v40 = vsel %vm319_vm9, %v334_v46, %v338_v17  ;;  %3557 = vmatprep.subr.bf16.mxu1 %v4303_v47  ;;  %v4634_v46 = vpack.c.bf16 %v608_v44, %v607_v36  ;;  %v568_v3 = vrot.slane %v551_v58, 2  ;;  %v576_v11 = vrot.slane %v554_v63, 2 }
 0x257   :  { %3112 = vmatprep.mubr.msk.f32.mxu0 %vm95_vm0, %v339_v40  ;;  %3583 = vmatpush3.bf16.msra.mxu0 %v4405_v12  ;;  %v574_v17 = vrot.slane %v553_v13, 2  ;;  %v582_v40 = vrot.slane %v4588_v38, 2  ;;  %v581_v25 = vrot.slane %v556_v42, 2  ;;  %v579_v38 = vrot.slane %v4590_v39, 2 }
 0x258   :  { %3585 = vmatprep.subr.bf16.mxu0 %v4409_v15  ;;  %v570_v16 = vsel %vm567_vm10, %v568_v3, %v569_v8  ;;  %v577_v54 = vsel %vm567_vm10, %v572_v33, %v576_v11  ;;  %v557_v33 = vld [vmem:[#allocation2 + $0x50] sm:$0x3]  ;;  %v578_v36 = vrot.slane %v555_v41, 2  ;;  %v108_v42 = vstv %s72_s2 }
 0x259   :  { %451 = vmatmul.mubr.f32.gmra.mrb[10].mxu0 %v337_v22  ;;  %3559 = vmatpush1.bf16.msra.mxu1 %v4612_v20  ;;  %v558_v22 = vld [vmem:[#allocation2 + $0x58] sm:$0x3]  ;;  %v575_v29 = vsel %vm567_vm10, %v569_v8, %v574_v17  ;;  %v583_v49 = vsel %vm567_vm10, %v581_v25, %v582_v40  ;;  %v584_v50 = vrot.slane %v557_v33, 2 }
 0x25a   :  { %3560 = vmatprep.subr.bf16.mxu1 %v4303_v47  ;;  %v586_v30 = vrot.slane %v558_v22, 2  ;;  %v580_v44 = vsel %vm567_vm10, %v578_v36, %v579_v38  ;;  %v4683_v22 = vmul.f32 %v108_v42, %v4386_v0 }
 0x25b   :  { %3587 = vmatpush3.bf16.msra.mxu0 %v4409_v15  ;;  %v585_v39 = vsel %vm567_vm10, %v579_v38, %v584_v50 }
 0x25c   :  { %3589 = vmatprep.subr.bf16.mxu0 %v4413_v18  ;;  %v587_v56 = vsel %vm567_vm10, %v582_v40, %v586_v30 }
 0x25d   :  { %3562 = vmatpush1.bf16.msra.mxu1 %v4622_v26 }
 0x25e   :  { %3563 = vmatprep.subr.bf16.mxu1 %v4303_v47 }
 0x25f   :  { %3591 = vmatpush3.bf16.msra.mxu0 %v4413_v18 }
 0x260   :  { %3593 = vmatprep.subr.bf16.mxu0 %v4417_v21 }
 0x261   :  { %3565 = vmatpush1.bf16.msra.mxu1 %v4628_v35 }
 0x262   :  { %3566 = vmatprep.subr.bf16.mxu1 %v4303_v47 }
 0x263   :  { %3595 = vmatpush3.bf16.msra.mxu0 %v4417_v21 }
 0x264   :  { %3597 = vmatprep.subr.bf16.mxu0 %v4421_v24 }
 0x265   :  { %3568 = vmatpush1.bf16.msra.mxu1 %v4634_v46 }
 0x266   :  { %3569 = vmatprep.subr.bf16.mxu1 %v4303_v47 }
 0x267   :  { %3599 = vmatpush3.bf16.msra.mxu0 %v4421_v24 }
 0x268   :  { %3601 = vmatprep.subr.bf16.mxu0 %v4425_v27 }
 0x269   :  { %3571 = vmatpush1.bf16.msra.mxu1 %v4640_v60 }
 0x26a   :  { %3686 = vmatprep.subr.bf16.mxu1 %v4396_v6 }
 0x26b   :  { %3603 = vmatpush3.bf16.msra.mxu0 %v4425_v27 }
 0x26c   :  { %684 = vmatmul.mubr.f32.vlgmr.msra.gmra.mrb[0].mxu1 %v570_v16  ;;  %3604 = vmatprep.subr.bf16.mxu0 %v4303_v47 }
 0x26d   :  { %3118 = vmatprep.mubr.msk.f32.mxu1 %vm95_vm0, %v577_v54  ;;  %3688 = vmatpush3.bf16.msra.mxu1 %v4396_v6  ;;  %v4680_v54 = vstv %s3108_s5 }
 0x26e   :  { %3690 = vmatprep.subr.bf16.mxu1 %v4398_v9 }
 0x270   :  { %689 = vmatmul.mubr.f32.gmra.mrb[2].mxu1 %v575_v29 }
 0x271   :  { %3119 = vmatprep.mubr.msk.f32.mxu1 %vm95_vm0, %v583_v49  ;;  %3692 = vmatpush3.bf16.msra.mxu1 %v4398_v9  ;;  %v4687_v49 = vmul.f32 %v108_v42, %v4392_v2 }
 0x272   :  { %3694 = vmatprep.subr.bf16.mxu1 %v4405_v12 }
 0x274   :  { %694 = vmatmul.mubr.f32.gmra.mrb[4].mxu1 %v580_v44 }
 0x275   :  { %3120 = vmatprep.mubr.msk.f32.mxu1 %vm95_vm0, %v587_v56  ;;  %3696 = vmatpush3.bf16.msra.mxu1 %v4405_v12  ;;  %v4692_v56 = vmul.f32 %v108_v42, %v4388_v1 }
 0x276   :  { %3698 = vmatprep.subr.bf16.mxu1 %v4409_v15 }
 0x278   :  { %699 = vmatmul.mubr.f32.gmra.mrb[6].mxu1 %v585_v39 }
 0x279   :  { %3700 = vmatpush3.bf16.msra.mxu1 %v4409_v15 }
 0x27a   :  { %3702 = vmatprep.subr.bf16.mxu1 %v4413_v18 }
 0x27d   :  { %3704 = vmatpush3.bf16.msra.mxu1 %v4413_v18 }
 0x27e   :  { %3706 = vmatprep.subr.bf16.mxu1 %v4417_v21 }
 0x281   :  { %3708 = vmatpush3.bf16.msra.mxu1 %v4417_v21 }
 0x282   :  { %3710 = vmatprep.subr.bf16.mxu1 %v4421_v24 }
 0x285   :  { %3712 = vmatpush3.bf16.msra.mxu1 %v4421_v24 }
 0x286   :  { %3714 = vmatprep.subr.bf16.mxu1 %v4425_v27 }
 0x289   :  { %3716 = vmatpush3.bf16.msra.mxu1 %v4425_v27 }
 0x28a   :  { %3717 = vmatprep.subr.bf16.mxu1 %v4303_v47 }
 0x320   :  { %v437_v58 = vpop.f32.mrb[4].mxu0 }
 0x321   :  { %v439_v63 = vpop.f32.mrb[5].mxu0 }
 0x324   :  { %v442_v3 = vpop.f32.mrb[6].mxu0 }
 0x325   :  { %v444_v8 = vpop.f32.mrb[7].mxu0 }
 0x328   :  { %v447_v11 = vpop.f32.mrb[8].mxu0 }
 0x329   :  { %v449_v13 = vpop.f32.mrb[9].mxu0 }
 0x32c   :  { %v452_v16 = vpop.f32.mrb[10].mxu0 }
 0x32d   :  { %v454_v17 = vpop.f32.mrb[11].mxu0 }
 0x33f   :  { %v685_v40 = vpop.f32.mrb[0].mxu1 }
 0x340   :  { %v4024_v25 = vadd.f32 %v685_v40, %v437_v58  ;;  %v687_v41 = vpop.f32.mrb[1].mxu1 }
 0x342   :  { %v709_v29 = vmul.f32 %v4024_v25, %v4680_v54 }
 0x343   :  { %v690_v38 = vpop.f32.mrb[2].mxu1 }
 0x344   :  { %v4025_v30 = vadd.f32 %v690_v38, %v442_v3  ;;  %v692_v33 = vpop.f32.mrb[3].mxu1  ;;  %v713_v36 = vsub.f32 %v4683_v22, %v709_v29  ;;  %v4697_v3 = vmul.f32 %v108_v42, %v4394_v5 }
 0x346   :  { %v710_v44 = vmul.f32 %v4025_v30, %v4680_v54  ;;  %717 = vmax.xlane.f32.xlu0 %v713_v36 }
 0x347   :  { %v695_v50 = vpop.f32.mrb[4].mxu1 }
 0x348   :  { %v4026_v0 = vadd.f32 %v695_v50, %v447_v11  ;;  %v697_v39 = vpop.f32.mrb[5].mxu1  ;;  %v714_v58 = vsub.f32 %v4687_v49, %v710_v44 }
 0x34a   :  { %v711_v63 = vmul.f32 %v4026_v0, %v4680_v54  ;;  %719 = vmax.xlane.f32.xlu1 %v714_v58 }
 0x34b   :  { %v700_v2 = vpop.f32.mrb[6].mxu1 }
 0x34c   :  { %v4027_v8 = vadd.f32 %v700_v2, %v452_v16  ;;  %v702_v13 = vpop.f32.mrb[7].mxu1  ;;  %v715_v17 = vsub.f32 %v4692_v56, %v711_v63 }
 0x34e   :  { %v712_v40 = vmul.f32 %v4027_v8, %v4680_v54  ;;  %721 = vmax.xlane.f32.xlu0 %v715_v17 }
 0x350   :  { %v716_v1 = vsub.f32 %v4697_v3, %v712_v40 }
 0x352   :  { %723 = vmax.xlane.f32.xlu0 %v716_v1 }
 0x3d3   :  { %v718_v11 = vpop.xlane.xlu0 %717 }
 0x3d4   :  { %v725_v25 = vsub.f32 %v713_v36, %v718_v11 }
 0x3d6   :  { %v729_v41 = vmul.f32 1.442695, %v725_v25 }
 0x3d7   :  { %v720_v29 = vpop.xlane.xlu1 %719 }
 0x3d8   :  { %4125 = vpow2.f32 %v729_v41  ;;  %v726_v38 = vsub.f32 %v714_v58, %v720_v29 }
 0x3da   :  { %v731_v30 = vmul.f32 1.442695, %v726_v38 }
 0x3db   :  { %v722_v33 = vpop.xlane.xlu0 %721 }
 0x3dc   :  { %4127 = vpow2.f32 %v731_v30  ;;  %v727_v5 = vsub.f32 %v715_v17, %v722_v33 }
 0x3de   :  { %v733_v16 = vmul.f32 1.442695, %v727_v5 }
 0x3df   :  { %v724_v42 = vpop.xlane.xlu0 %723 }
 0x3e0   :  { %4129 = vpow2.f32 %v733_v16  ;;  %v728_v44 = vsub.f32 %v716_v1, %v724_v42 }
 0x3e2   :  { %v4126_v50 = vpop.eup %4125  ;;  %v735_v0 = vmul.f32 1.442695, %v728_v44 }
 0x3e3   :  { %3339 = vmatprep.mubr.f32.mxu0 %v4126_v50 }
 0x3e4   :  { %4131 = vpow2.f32 %v735_v0 }
 0x3e6   :  { %v4128_v39 = vpop.eup %4127 }
 0x3e7   :  { %3340 = vmatmul.mubr.f32.vlgmr.msra.gmra.mrb[12].mxu0 %v4128_v39 }
 0x3e8   :  { %3606 = vmatpush1.bf16.msra.mxu0 %v4464_v53 }
 0x3e9   :  { %3607 = vmatprep.subr.bf16.mxu0 %v4303_v47 }
 0x3ea   :  { %v4130_v36 = vpop.eup %4129 }
 0x3eb   :  { %3342 = vmatprep.mubr.f32.mxu0 %v4130_v36 }
 0x3ec   :  { %3609 = vmatpush1.bf16.msra.mxu0 %v4471_v59 }
 0x3ed   :  { %3610 = vmatprep.subr.bf16.mxu0 %v4303_v47 }
 0x3ee   :  { %v4132_v58 = vpop.eup %4131 }
 0x3ef   :  { %3343 = vmatmul.mubr.f32.gmra.mrb[14].mxu0 %v4132_v58 }
 0x3f0   :  { %3612 = vmatpush1.bf16.msra.mxu0 %v4479_v4 }
 0x3f1   :  { %3613 = vmatprep.subr.bf16.mxu0 %v4303_v47 }
 0x3f4   :  { %3615 = vmatpush1.bf16.msra.mxu0 %v4487_v14 }
 0x3f5   :  { %3616 = vmatprep.subr.bf16.mxu0 %v4303_v47 }
 0x3f8   :  { %3618 = vmatpush1.bf16.msra.mxu0 %v4495_v23 }
 0x3f9   :  { %3619 = vmatprep.subr.bf16.mxu0 %v4303_v47 }
 0x3fc   :  { %3621 = vmatpush1.bf16.msra.mxu0 %v4503_v31 }
 0x3fd   :  { %3622 = vmatprep.subr.bf16.mxu0 %v4303_v47 }
 0x400   :  { %3624 = vmatpush1.bf16.msra.mxu0 %v4516_v45 }
 0x401   :  { %3625 = vmatprep.subr.bf16.mxu0 %v4303_v47 }
 0x404   :  { %3627 = vmatpush1.bf16.msra.mxu0 %v4526_v57 }
 0x405   :  { %3628 = vmatprep.subr.bf16.mxu0 %v4303_v47 }
 0x408   :  { %3630 = vmatpush1.bf16.msra.mxu0 %v4534_v7 }
 0x409   :  { %3631 = vmatprep.subr.bf16.mxu0 %v4303_v47 }
 0x4ba   :  { %v3341_v53 = vpop.f32.mrb[12].mxu0 }
 0x4bb   :  { %4133 = vrcp.f32 %v3341_v53  ;;  %v803_v59 = vpop.f32.mrb[13].mxu0 }
 0x4bc   :  { %4135 = vrcp.f32 %v803_v59 }
 0x4c2   :  { %v3344_v4 = vpop.f32.mrb[14].mxu0 }
 0x4c3   :  { %4137 = vrcp.f32 %v3344_v4  ;;  %v813_v14 = vpop.f32.mrb[15].mxu0 }
 0x4c4   :  { %4139 = vrcp.f32 %v813_v14 }
 0x4c5   :  { %v4134_v23 = vpop.eup %4133 }
 0x4c6   :  { %v4136_v31 = vpop.eup %4135  ;;  %v825_v45 = vmul.f32 %v4134_v23, %v4128_v39 }
 0x4c7   :  { %v823_v63 = vmul.f32 %v4136_v31, %v4126_v50 }
 0x4c8   :  { %v835_v2 = vrot.slane %v825_v45, 7 }
 0x4c9   :  { %v834_v57 = vrot.slane %v823_v63, 7 }
 0x4cb   :  { %840 = vrot.lane.b32.xlu0 %v834_v57, %s4300_s28  ;;  %v836_v7 = vsel %vm230_vm2, %v834_v57, %v835_v2 }
 0x4cc   :  { %842 = vrot.lane.b32.xlu1 %v836_v7, %s4300_s28 }
 0x4cd   :  { %v4138_v8 = vpop.eup %4137 }
 0x4ce   :  { %v4140_v13 = vpop.eup %4139  ;;  %v829_v17 = vmul.f32 %v4138_v8, %v4132_v58 }
 0x4cf   :  { %v827_v40 = vmul.f32 %v4140_v13, %v4130_v36 }
 0x4d0   :  { %844 = vrot.lane.b32.xlu1 %v835_v2, %s4300_s28  ;;  %v838_v1 = vrot.slane %v829_v17, 7 }
 0x4d1   :  { %v837_v11 = vrot.slane %v827_v40, 7 }
 0x4d3   :  { %v839_v25 = vsel %vm230_vm2, %v837_v11, %v838_v1 }
 0x4d4   :  { %846 = vrot.lane.b32.xlu1 %v837_v11, %s4300_s28  ;;  %848 = vrot.lane.b32.xlu0 %v839_v25, %s4300_s28 }
 0x4d8   :  { %850 = vrot.lane.b32.xlu1 %v838_v1, %s4300_s28 }
 0x53d   :  { %v841_v41 = vpop.permute.xlu0 %840 }
 0x53e   :  { %858 = vst.msk [vmem:[#allocation2] sm:$0xfe] %vm255_vm3, %v841_v41  ;;  %v843_v29 = vpop.permute.xlu1 %842 }
 0x53f   :  { %859 = vst.msk [vmem:[#allocation2 + $0x8] sm:$0xfe] %vm257_vm4, %v841_v41 }
 0x540   :  { %860 = vst.msk [vmem:[#allocation2 + $0x10] sm:$0xff] %vm259_vm5, %v843_v29 }
 0x541   :  { %861 = vst.msk [vmem:[#allocation2 + $0x18] sm:$0xff] %vm261_vm6, %v843_v29 }
 0x542   :  { %v845_v38 = vpop.permute.xlu1 %844 }
 0x543   :  { %862 = vst.msk [vmem:[#allocation2 + $0x20] sm:$0x1] %vm263_vm7, %v845_v38 }
 0x544   :  { %863 = vst.msk [vmem:[#allocation2 + $0x28] sm:$0x1] %vm265_vm8, %v845_v38 }
 0x545   :  { %v896_v33 = vld [vmem:[#allocation2] sm:$0xfe] }
 0x546   :  { %v897_v30 = vld [vmem:[#allocation2 + $0x8] sm:$0xfe]  ;;  %v847_v5 = vpop.permute.xlu1 %846  ;;  %v849_v16 = vpop.permute.xlu0 %848  ;;  %v916_v0 = vrot.slane %v896_v33, 1 }
 0x547   :  { %v919_v44 = vrot.slane %v897_v30, 1  ;;  %v4736_v50 = vld [vmem:[#allocation2 + $0x10] sm:$0xff]  ;;  %864 = vst.msk [vmem:[#allocation2 + $0x30] sm:$0xfe] %vm255_vm3, %v847_v5  ;;  %v871_v33 = vld [vmem:[#allocation2 + $0x8] sm:$0xff] }
 0x548   :  { %v4734_v42 = vld [vmem:[#allocation2 + $0x18] sm:$0xff]  ;;  %865 = vst.msk [vmem:[#allocation2 + $0x38] sm:$0xfe] %vm257_vm4, %v847_v5  ;;  %v917_v36 = vrot.slane %v4736_v50, 1 }
 0x549   :  { %866 = vst.msk [vmem:[#allocation2 + $0x40] sm:$0xff] %vm259_vm5, %v849_v16  ;;  %v920_v39 = vrot.slane %v4734_v42, 1 }
 0x54a   :  { %867 = vst.msk [vmem:[#allocation2 + $0x48] sm:$0xff] %vm261_vm6, %v849_v16  ;;  %v918_v53 = vsel %vm319_vm9, %v916_v0, %v917_v36  ;;  %v851_v59 = vpop.permute.xlu1 %850  ;;  %v898_v14 = vld [vmem:[#allocation2 + $0x20] sm:$0x1] }
 0x54b   :  { %v921_v58 = vsel %vm319_vm9, %v919_v44, %v920_v39  ;;  %v899_v4 = vld [vmem:[#allocation2 + $0x28] sm:$0x1]  ;;  %868 = vst.msk [vmem:[#allocation2 + $0x50] sm:$0x1] %vm263_vm7, %v851_v59  ;;  %v922_v31 = vrot.slane %v898_v14, 1 }
 0x54c   :  { %3121 = vmatprep.mubr.msk.f32.mxu0 %vm95_vm0, %v921_v58  ;;  %869 = vst.msk [vmem:[#allocation2 + $0x58] sm:$0x1] %vm265_vm8, %v851_v59  ;;  %v924_v23 = vrot.slane %v899_v4, 1  ;;  %v1148_v5 = vld [vmem:[#allocation2 + $0x20] sm:$0x3] }
 0x54d   :  { %1031 = vmatmul.mubr.f32.vlgmr.msra.gmra.mrb[16].mxu0 %v918_v53  ;;  %v923_v63 = vsel %vm319_vm9, %v917_v36, %v922_v31  ;;  %v1168_v16 = vrot.slane %v1148_v5, 2 }
 0x54e   :  { %3633 = vmatpush1.bf16.msra.mxu0 %v4447_v48  ;;  %v925_v45 = vsel %vm319_vm9, %v920_v39, %v924_v23  ;;  %v900_v17 = vld [vmem:[#allocation2 + $0x30] sm:$0xfe] }
 0x54f   :  { %3634 = vmatprep.subr.bf16.mxu0 %v4303_v47  ;;  %3122 = vmatprep.mubr.msk.f32.mxu0 %vm95_vm0, %v925_v45  ;;  %v901_v57 = vld [vmem:[#allocation2 + $0x38] sm:$0xfe]  ;;  %v926_v40 = vrot.slane %v900_v17, 1  ;;  %v1150_v0 = vld [vmem:[#allocation2 + $0x30] sm:$0xfc] }
 0x550   :  { %v4756_v7 = vld [vmem:[#allocation2 + $0x40] sm:$0xff]  ;;  %v929_v8 = vrot.slane %v901_v57, 1  ;;  %v1172_v39 = vrot.slane %v1150_v0, 2  ;;  %v1536_v0 = vld [vmem:[#allocation7 + $0xb0] sm:$0xff] }
 0x551   :  { %v4754_v2 = vld [vmem:[#allocation2 + $0x48] sm:$0xff]  ;;  %1036 = vmatmul.mubr.f32.gmra.mrb[18].mxu0 %v923_v63  ;;  %v927_v48 = vrot.slane %v4756_v7, 1  ;;  %v1173_v36 = vrot.slane %v4756_v7, 2 }
 0x552   :  { %v930_v13 = vrot.slane %v4754_v2, 1  ;;  %3636 = vmatpush1.bf16.msra.mxu0 %v4467_v55  ;;  %v902_v41 = vld [vmem:[#allocation2 + $0x50] sm:$0x1]  ;;  %v1176_v44 = vrot.slane %v4754_v2, 2 }
 0x553   :  { %3637 = vmatprep.subr.bf16.mxu0 %v4303_v47  ;;  %v928_v11 = vsel %vm319_vm9, %v926_v40, %v927_v48  ;;  %v903_v25 = vld [vmem:[#allocation2 + $0x58] sm:$0x1]  ;;  %v932_v38 = vrot.slane %v902_v41, 1  ;;  %v1152_v59 = vld [vmem:[#allocation2 + $0x50] sm:$0x3]  ;;  %v1174_v4 = vsel %vm567_vm10, %v1172_v39, %v1173_v36  ;;  %v1538_v39 = vld [vmem:[#allocation7 + $0xc0] sm:$0xff] }
 0x554   :  { %v931_v1 = vsel %vm319_vm9, %v929_v8, %v930_v13  ;;  %v934_v29 = vrot.slane %v903_v25, 1  ;;  %v1178_v14 = vrot.slane %v1152_v59, 2  ;;  %v1541_v59 = vld [vmem:[#allocation7 + $0xd8] sm:$0xff] }
 0x555   :  { %3123 = vmatprep.mubr.msk.f32.mxu0 %vm95_vm0, %v931_v1  ;;  %v933_v55 = vsel %vm319_vm9, %v927_v48, %v932_v38 }
 0x556   :  { %1041 = vmatmul.mubr.f32.gmra.mrb[20].mxu0 %v928_v11  ;;  %v935_v30 = vsel %vm319_vm9, %v930_v13, %v934_v29  ;;  %v1179_v31 = vsel %vm567_vm10, %v1173_v36, %v1178_v14  ;;  %v1539_v36 = vld [vmem:[#allocation7 + $0xc8] sm:$0xff]  ;;  %v1542_v14 = vld [vmem:[#allocation7 + $0xe0] sm:$0xff] }
 0x557   :  { %3639 = vmatpush1.bf16.msra.mxu0 %v4475_v62  ;;  %3124 = vmatprep.mubr.msk.f32.mxu0 %vm95_vm0, %v935_v30  ;;  %v870_v62 = vld [vmem:[#allocation2] sm:$0xff] }
 0x558   :  { %3640 = vmatprep.subr.bf16.mxu0 %v4303_v47 }
 0x55a   :  { %1046 = vmatmul.mubr.f32.gmra.mrb[22].mxu0 %v933_v55 }
 0x55b   :  { %3642 = vmatpush1.bf16.msra.mxu0 %v4483_v10  ;;  %3125 = vmatprep.mubr.msk.f32.mxu0 %vm95_vm0, %v871_v33  ;;  %v875_v10 = vld [vmem:[#allocation2 + $0x38] sm:$0xff] }
 0x55c   :  { %3643 = vmatprep.subr.bf16.mxu0 %v4303_v47 }
 0x55f   :  { %3645 = vmatpush1.bf16.msra.mxu0 %v4491_v19  ;;  %v1147_v19 = vld [vmem:[#allocation2 + $0x8] sm:$0xfc] }
 0x560   :  { %3646 = vmatprep.subr.bf16.mxu0 %v4303_v47 }
 0x563   :  { %3648 = vmatpush1.bf16.msra.mxu0 %v4499_v28  ;;  %v874_v28 = vld [vmem:[#allocation2 + $0x30] sm:$0xff] }
 0x564   :  { %3649 = vmatprep.subr.bf16.mxu0 %v4303_v47 }
 0x567   :  { %3651 = vmatpush1.bf16.msra.mxu0 %v4507_v32  ;;  %v1165_v32 = vrot.slane %v1147_v19, 2 }
 0x568   :  { %3652 = vmatprep.subr.bf16.mxu0 %v4303_v47 }
 0x56b   :  { %3654 = vmatpush1.bf16.msra.mxu0 %v4514_v37  ;;  %v1166_v37 = vrot.slane %v4734_v42, 2 }
 0x56c   :  { %3655 = vmatprep.subr.bf16.mxu0 %v4303_v47 }
 0x56f   :  { %3657 = vmatpush1.bf16.msra.mxu0 %v4524_v51  ;;  %v1167_v51 = vsel %vm567_vm10, %v1165_v32, %v1166_v37 }
 0x570   :  { %3658 = vmatprep.subr.bf16.mxu0 %v4303_v47 }
 0x572   :  { %1126 = vmatmul.mubr.f32.vlgmr.msra.gmra.mrb[16].mxu0 %v870_v62 }
 0x573   :  { %3126 = vmatprep.mubr.msk.f32.mxu0 %vm95_vm0, %v4734_v42  ;;  %3660 = vmatpush1.bf16.msra.mxu0 %v4556_v34  ;;  %v1146_v34 = vld [vmem:[#allocation2] sm:$0xfc] }
 0x574   :  { %3661 = vmatprep.subr.bf16.mxu0 %v4303_v47 }
 0x576   :  { %1131 = vmatmul.mubr.f32.gmra.mrb[18].mxu0 %v4736_v50 }
 0x577   :  { %3127 = vmatprep.mubr.msk.f32.mxu0 %vm95_vm0, %v875_v10  ;;  %3663 = vmatpush1.bf16.msra.mxu0 %v4570_v61  ;;  %v1149_v61 = vld [vmem:[#allocation2 + $0x28] sm:$0x3] }
 0x578   :  { %3664 = vmatprep.subr.bf16.mxu0 %v4303_v47 }
 0x57a   :  { %1136 = vmatmul.mubr.f32.gmra.mrb[20].mxu0 %v874_v28 }
 0x57b   :  { %3128 = vmatprep.mubr.msk.f32.mxu0 %vm95_vm0, %v4754_v2  ;;  %3666 = vmatpush1.bf16.msra.mxu0 %v4582_v43  ;;  %v1162_v43 = vrot.slane %v1146_v34, 2 }
 0x57c   :  { %3667 = vmatprep.subr.bf16.mxu0 %v4303_v47 }
 0x57e   :  { %1141 = vmatmul.mubr.f32.gmra.mrb[22].mxu0 %v4756_v7 }
 0x57f   :  { %3669 = vmatpush1.bf16.msra.mxu0 %v4598_v52  ;;  %3129 = vmatprep.mubr.msk.f32.mxu0 %vm95_vm0, %v1167_v51  ;;  %v1163_v52 = vrot.slane %v4736_v50, 2  ;;  %v1153_v50 = vld [vmem:[#allocation2 + $0x58] sm:$0x3] }
 0x580   :  { %3670 = vmatprep.subr.bf16.mxu0 %v4303_v47  ;;  %v1180_v53 = vrot.slane %v1153_v50, 2  ;;  %v1537_v50 = vld [vmem:[#allocation7 + $0xb8] sm:$0xff] }
 0x582   :  { %v1181_v23 = vsel %vm567_vm10, %v1176_v44, %v1180_v53  ;;  %v1540_v53 = vld [vmem:[#allocation7 + $0xd0] sm:$0xff] }
 0x583   :  { %3672 = vmatpush1.bf16.msra.mxu0 %v4612_v20  ;;  %v1170_v20 = vrot.slane %v1149_v61, 2 }
 0x584   :  { %3673 = vmatprep.subr.bf16.mxu0 %v4303_v47 }
 0x585   :  { %v1171_v42 = vsel %vm567_vm10, %v1166_v37, %v1170_v20 }
 0x587   :  { %3675 = vmatpush1.bf16.msra.mxu0 %v4622_v26  ;;  %v1151_v26 = vld [vmem:[#allocation2 + $0x38] sm:$0xfc] }
 0x588   :  { %3676 = vmatprep.subr.bf16.mxu0 %v4303_v47 }
 0x58b   :  { %3678 = vmatpush1.bf16.msra.mxu0 %v4628_v35  ;;  %v1164_v35 = vsel %vm567_vm10, %v1162_v43, %v1163_v52 }
 0x58c   :  { %3679 = vmatprep.subr.bf16.mxu0 %v4303_v47 }
 0x58f   :  { %3681 = vmatpush1.bf16.msra.mxu0 %v4634_v46  ;;  %v1175_v46 = vrot.slane %v1151_v26, 2  ;;  %v1532_v26 = vld [vmem:[#allocation7 + $0x90] sm:$0xff] }
 0x590   :  { %3682 = vmatprep.subr.bf16.mxu0 %v4303_v47 }
 0x591   :  { %v1177_v58 = vsel %vm567_vm10, %v1175_v46, %v1176_v44  ;;  %v1535_v46 = vld [vmem:[#allocation7 + $0xa8] sm:$0xff] }
 0x593   :  { %3684 = vmatpush1.bf16.msra.mxu0 %v4640_v60  ;;  %v1169_v60 = vsel %vm567_vm10, %v1163_v52, %v1168_v16  ;;  %v1534_v16 = vld [vmem:[#allocation7 + $0xa0] sm:$0xff] }
 0x594   :  { %3799 = vmatprep.subr.bf16.mxu0 %v4396_v6  ;;  %v4860_v44 = vpack.c.bf16 %v1535_v46, %v1534_v16 }
 0x596   :  { %1277 = vmatmul.mubr.f32.vlgmr.msra.gmra.mrb[16].mxu0 %v1164_v35  ;;  %v1533_v35 = vld [vmem:[#allocation7 + $0x98] sm:$0xff] }
 0x597   :  { %3130 = vmatprep.mubr.msk.f32.mxu0 %vm95_vm0, %v1171_v42  ;;  %3801 = vmatpush3.bf16.msra.mxu0 %v4396_v6  ;;  %v4857_v42 = vpack.c.bf16 %v1533_v35, %v1532_v26  ;;  %v1471_v35 = vld [vmem:[#allocation7 + $0x8] sm:$0xff] }
 0x598   :  { %3803 = vmatprep.subr.bf16.mxu0 %v4398_v9 }
 0x59a   :  { %1282 = vmatmul.mubr.f32.gmra.mrb[18].mxu0 %v1169_v60  ;;  %v4864_v60 = vpack.c.bf16 %v1537_v50, %v1536_v0 }
 0x59b   :  { %3131 = vmatprep.mubr.msk.f32.mxu0 %vm95_vm0, %v1177_v58  ;;  %3805 = vmatpush3.bf16.msra.mxu0 %v4398_v9  ;;  %v4868_v58 = vpack.c.bf16 %v1539_v36, %v1538_v39 }
 0x59c   :  { %3807 = vmatprep.subr.bf16.mxu0 %v4405_v12 }
 0x59e   :  { %1287 = vmatmul.mubr.f32.gmra.mrb[20].mxu0 %v1174_v4  ;;  %v4872_v4 = vpack.c.bf16 %v1541_v59, %v1540_v53 }
 0x59f   :  { %3132 = vmatprep.mubr.msk.f32.mxu0 %vm95_vm0, %v1181_v23  ;;  %3809 = vmatpush3.bf16.msra.mxu0 %v4405_v12  ;;  %v1543_v23 = vld [vmem:[#allocation7 + $0xe8] sm:$0xff] }
 0x5a0   :  { %3811 = vmatprep.subr.bf16.mxu0 %v4409_v15 }
 0x5a2   :  { %1292 = vmatmul.mubr.f32.gmra.mrb[22].mxu0 %v1179_v31  ;;  %v4876_v31 = vpack.c.bf16 %v1543_v23, %v1542_v14 }
 0x5a3   :  { %3813 = vmatpush3.bf16.msra.mxu0 %v4409_v15 }
 0x5a4   :  { %3815 = vmatprep.subr.bf16.mxu0 %v4413_v18 }
 0x5a7   :  { %3817 = vmatpush3.bf16.msra.mxu0 %v4413_v18 }
 0x5a8   :  { %3819 = vmatprep.subr.bf16.mxu0 %v4417_v21 }
 0x5ab   :  { %3821 = vmatpush3.bf16.msra.mxu0 %v4417_v21 }
 0x5ac   :  { %3823 = vmatprep.subr.bf16.mxu0 %v4421_v24 }
 0x5af   :  { %3825 = vmatpush3.bf16.msra.mxu0 %v4421_v24 }
 0x5b0   :  { %3827 = vmatprep.subr.bf16.mxu0 %v4425_v27 }
 0x5b3   :  { %3829 = vmatpush3.bf16.msra.mxu0 %v4425_v27 }
 0x5b4   :  { %3830 = vmatprep.subr.bf16.mxu0 %v4303_v47 }
 0x669   :  { %v1278_v45 = vpop.f32.mrb[16].mxu0 }
 0x66a   :  { %v1301_v63 = vmul.f32 %v1278_v45, %v4680_v54  ;;  %v1280_v2 = vpop.f32.mrb[17].mxu0 }
 0x66b   :  { %v1544_v2 = vld [vmem:[#allocation7 + $0xf0] sm:$0xff] }
 0x66c   :  { %v1305_v57 = vsub.f32 %v4683_v22, %v1301_v63 }
 0x66d   :  { %v1283_v7 = vpop.f32.mrb[18].mxu0 }
 0x66e   :  { %v1302_v8 = vmul.f32 %v1283_v7, %v4680_v54  ;;  %1309 = vmax.xlane.f32.xlu0 %v1305_v57  ;;  %v1285_v13 = vpop.f32.mrb[19].mxu0 }
 0x66f   :  { %v1546_v13 = vld [vmem:[#allocation7 + $0x100] sm:$0xff] }
 0x670   :  { %v1306_v17 = vsub.f32 %v4687_v49, %v1302_v8 }
 0x671   :  { %v1288_v48 = vpop.f32.mrb[20].mxu0 }
 0x672   :  { %v1303_v40 = vmul.f32 %v1288_v48, %v4680_v54  ;;  %1311 = vmax.xlane.f32.xlu1 %v1306_v17  ;;  %v1290_v1 = vpop.f32.mrb[21].mxu0 }
 0x674   :  { %v1307_v11 = vsub.f32 %v4692_v56, %v1303_v40 }
 0x675   :  { %v1293_v25 = vpop.f32.mrb[22].mxu0 }
 0x676   :  { %v1304_v41 = vmul.f32 %v1293_v25, %v4680_v54  ;;  %1313 = vmax.xlane.f32.xlu0 %v1307_v11  ;;  %v1295_v29 = vpop.f32.mrb[23].mxu0 }
 0x677   :  { %v1549_v29 = vld [vmem:[#allocation7 + $0x118] sm:$0xff] }
 0x678   :  { %v1308_v38 = vsub.f32 %v4697_v3, %v1304_v41  ;;  %v1548_v41 = vld [vmem:[#allocation7 + $0x110] sm:$0xff] }
 0x67a   :  { %1315 = vmax.xlane.f32.xlu0 %v1308_v38 }
 0x6fb   :  { %v1310_v30 = vpop.xlane.xlu0 %1309 }
 0x6fc   :  { %v1317_v55 = vsub.f32 %v1305_v57, %v1310_v30  ;;  %v1545_v57 = vld [vmem:[#allocation7 + $0xf8] sm:$0xff]  ;;  %v4890_v30 = vpack.c.bf16 %v1549_v29, %v1548_v41  ;;  %v1474_v41 = vld [vmem:[#allocation7 + $0x20] sm:$0xff]  ;;  %v1475_v29 = vld [vmem:[#allocation7 + $0x28] sm:$0xff] }
 0x6fd   :  { %v4881_v7 = vpack.c.bf16 %v1545_v57, %v1544_v2  ;;  %v1473_v2 = vld [vmem:[#allocation7 + $0x18] sm:$0xff] }
 0x6fe   :  { %v1321_v33 = vmul.f32 1.442695, %v1317_v55 }
 0x6ff   :  { %v1312_v62 = vpop.xlane.xlu1 %1311 }
 0x700   :  { %4141 = vpow2.f32 %v1321_v33  ;;  %v1318_v10 = vsub.f32 %v1306_v17, %v1312_v62  ;;  %v1547_v17 = vld [vmem:[#allocation7 + $0x108] sm:$0xff] }
 0x701   :  { %v4885_v40 = vpack.c.bf16 %v1547_v17, %v1546_v13 }
 0x702   :  { %v1323_v19 = vmul.f32 1.442695, %v1318_v10 }
 0x703   :  { %v1314_v28 = vpop.xlane.xlu0 %1313 }
 0x704   :  { %4143 = vpow2.f32 %v1323_v19  ;;  %v1319_v32 = vsub.f32 %v1307_v11, %v1314_v28 }
 0x706   :  { %v1325_v37 = vmul.f32 1.442695, %v1319_v32 }
 0x707   :  { %v1316_v51 = vpop.xlane.xlu0 %1315 }
 0x708   :  { %4145 = vpow2.f32 %v1325_v37  ;;  %v1320_v34 = vsub.f32 %v1308_v38, %v1316_v51 }
 0x70a   :  { %v4848_v61 = vpop.eup %4141  ;;  %v1327_v43 = vmul.f32 1.442695, %v1320_v34 }
 0x70b   :  { %3377 = vmatprep.mubr.f32.mxu1 %v4848_v61 }
 0x70c   :  { %4147 = vpow2.f32 %v1327_v43 }
 0x70e   :  { %v4144_v52 = vpop.eup %4143 }
 0x70f   :  { %3378 = vmatmul.mubr.f32.vlgmr.msra.gmra.mrb[8].mxu1 %v4144_v52 }
 0x710   :  { %3719 = vmatpush1.bf16.msra.mxu1 %v4857_v42 }
 0x711   :  { %3720 = vmatprep.subr.bf16.mxu1 %v4303_v47 }
 0x712   :  { %v4851_v20 = vpop.eup %4145 }
 0x713   :  { %3380 = vmatprep.mubr.f32.mxu1 %v4851_v20 }
 0x714   :  { %3722 = vmatpush1.bf16.msra.mxu1 %v4860_v44 }
 0x715   :  { %3723 = vmatprep.subr.bf16.mxu1 %v4303_v47 }
 0x716   :  { %v4854_v5 = vpop.eup %4147 }
 0x717   :  { %3381 = vmatmul.mubr.f32.gmra.mrb[10].mxu1 %v4854_v5 }
 0x718   :  { %3725 = vmatpush1.bf16.msra.mxu1 %v4864_v60 }
 0x719   :  { %3726 = vmatprep.subr.bf16.mxu1 %v4303_v47 }
 0x71c   :  { %3728 = vmatpush1.bf16.msra.mxu1 %v4868_v58 }
 0x71d   :  { %3729 = vmatprep.subr.bf16.mxu1 %v4303_v47 }
 0x720   :  { %3731 = vmatpush1.bf16.msra.mxu1 %v4872_v4 }
 0x721   :  { %3732 = vmatprep.subr.bf16.mxu1 %v4303_v47 }
 0x724   :  { %3734 = vmatpush1.bf16.msra.mxu1 %v4876_v31 }
 0x725   :  { %3735 = vmatprep.subr.bf16.mxu1 %v4303_v47 }
 0x728   :  { %3737 = vmatpush1.bf16.msra.mxu1 %v4881_v7 }
 0x729   :  { %3738 = vmatprep.subr.bf16.mxu1 %v4303_v47 }
 0x72c   :  { %3740 = vmatpush1.bf16.msra.mxu1 %v4885_v40 }
 0x72d   :  { %3741 = vmatprep.subr.bf16.mxu1 %v4303_v47 }
 0x730   :  { %3743 = vmatpush1.bf16.msra.mxu1 %v4890_v30 }
 0x731   :  { %3744 = vmatprep.subr.bf16.mxu1 %v4303_v47 }
 0x7e2   :  { %v3379_v45 = vpop.f32.mrb[8].mxu1 }
 0x7e3   :  { %4149 = vrcp.f32 %v3379_v45  ;;  %v1395_v63 = vpop.f32.mrb[9].mxu1 }
 0x7e4   :  { %4151 = vrcp.f32 %v1395_v63  ;;  %v1472_v63 = vld [vmem:[#allocation7 + $0x10] sm:$0xff] }
 0x7ea   :  { %v3382_v8 = vpop.f32.mrb[10].mxu1 }
 0x7eb   :  { %4153 = vrcp.f32 %v3382_v8  ;;  %v1405_v48 = vpop.f32.mrb[11].mxu1 }
 0x7ec   :  { %4155 = vrcp.f32 %v1405_v48 }
 0x7ed   :  { %v4150_v1 = vpop.eup %4149 }
 0x7ee   :  { %v4152_v11 = vpop.eup %4151  ;;  %v1417_v25 = vmul.f32 %v4150_v1, %v4144_v52  ;;  %v4928_v1 = vpack.c.bf16 %v1473_v2, %v1472_v63  ;;  %v1482_v2 = vld [vmem:[#allocation7 + $0x60] sm:$0xff] }
 0x7ef   :  { %v1415_v38 = vmul.f32 %v4152_v11, %v4848_v61 }
 0x7f0   :  { %v1427_v55 = vrot.slane %v1417_v25, 7 }
 0x7f1   :  { %v1426_v33 = vrot.slane %v1415_v38, 7 }
 0x7f3   :  { %1432 = vrot.lane.b32.xlu0 %v1426_v33, %s4300_s28  ;;  %v1428_v62 = vsel %vm230_vm2, %v1426_v33, %v1427_v55 }
 0x7f4   :  { %1434 = vrot.lane.b32.xlu1 %v1428_v62, %s4300_s28 }
 0x7f5   :  { %v4154_v10 = vpop.eup %4153 }
 0x7f6   :  { %v4156_v19 = vpop.eup %4155  ;;  %v1421_v28 = vmul.f32 %v4154_v10, %v4854_v5 }
 0x7f7   :  { %v1419_v32 = vmul.f32 %v4156_v19, %v4851_v20  ;;  %v1470_v20 = vld [vmem:[#allocation7] sm:$0xff] }
 0x7f8   :  { %1436 = vrot.lane.b32.xlu1 %v1427_v55, %s4300_s28  ;;  %v1430_v37 = vrot.slane %v1421_v28, 7  ;;  %v4920_v14 = vpack.c.bf16 %v1471_v35, %v1470_v20 }
 0x7f9   :  { %v1429_v51 = vrot.slane %v1419_v32, 7 }
 0x7fb   :  { %v1431_v34 = vsel %vm230_vm2, %v1429_v51, %v1430_v37 }
 0x7fc   :  { %1438 = vrot.lane.b32.xlu1 %v1429_v51, %s4300_s28  ;;  %1440 = vrot.lane.b32.xlu0 %v1431_v34, %s4300_s28  ;;  %v1476_v34 = vld [vmem:[#allocation7 + $0x30] sm:$0xff] }
 0x800   :  { %1442 = vrot.lane.b32.xlu1 %v1430_v37, %s4300_s28  ;;  %v4941_v37 = vpack.c.bf16 %v1475_v29, %v1474_v41  ;;  %v1778_v29 = vld [vmem:[#allocation7 + $0x120] sm:$0xff] }
 0x865   :  { %v1433_v61 = vpop.permute.xlu0 %1432 }
 0x866   :  { %1450 = vst.msk [vmem:[#allocation2] sm:$0xfe] %vm255_vm3, %v1433_v61  ;;  %v1435_v43 = vpop.permute.xlu1 %1434 }
 0x867   :  { %1451 = vst.msk [vmem:[#allocation2 + $0x8] sm:$0xfe] %vm257_vm4, %v1433_v61  ;;  %v1477_v61 = vld [vmem:[#allocation7 + $0x38] sm:$0xff] }
 0x868   :  { %1452 = vst.msk [vmem:[#allocation2 + $0x10] sm:$0xff] %vm259_vm5, %v1435_v43  ;;  %v4948_v35 = vpack.c.bf16 %v1477_v61, %v1476_v34  ;;  %v1783_v34 = vld [vmem:[#allocation7 + $0x148] sm:$0xff] }
 0x869   :  { %1453 = vst.msk [vmem:[#allocation2 + $0x18] sm:$0xff] %vm261_vm6, %v1435_v43 }
 0x86a   :  { %v1437_v52 = vpop.permute.xlu1 %1436 }
 0x86b   :  { %1454 = vst.msk [vmem:[#allocation2 + $0x20] sm:$0x1] %vm263_vm7, %v1437_v52 }
 0x86c   :  { %1455 = vst.msk [vmem:[#allocation2 + $0x28] sm:$0x1] %vm265_vm8, %v1437_v52 }
 0x86d   :  { %v1488_v26 = vld [vmem:[#allocation2] sm:$0xfe] }
 0x86e   :  { %v1489_v5 = vld [vmem:[#allocation2 + $0x8] sm:$0xfe]  ;;  %v1439_v16 = vpop.permute.xlu1 %1438  ;;  %v1441_v46 = vpop.permute.xlu0 %1440  ;;  %v1508_v36 = vrot.slane %v1488_v26, 1 }
 0x86f   :  { %v1511_v50 = vrot.slane %v1489_v5, 1  ;;  %v4912_v39 = vld [vmem:[#allocation2 + $0x10] sm:$0xff]  ;;  %1456 = vst.msk [vmem:[#allocation2 + $0x30] sm:$0xfe] %vm255_vm3, %v1439_v16 }
 0x870   :  { %v4910_v0 = vld [vmem:[#allocation2 + $0x18] sm:$0xff]  ;;  %1457 = vst.msk [vmem:[#allocation2 + $0x38] sm:$0xfe] %vm257_vm4, %v1439_v16  ;;  %v1509_v59 = vrot.slane %v4912_v39, 1 }
 0x871   :  { %1458 = vst.msk [vmem:[#allocation2 + $0x40] sm:$0xff] %vm259_vm5, %v1441_v46  ;;  %v1512_v53 = vrot.slane %v4910_v0, 1 }
 0x872   :  { %1459 = vst.msk [vmem:[#allocation2 + $0x48] sm:$0xff] %vm261_vm6, %v1441_v46  ;;  %v1510_v45 = vsel %vm319_vm9, %v1508_v36, %v1509_v59  ;;  %v1443_v57 = vpop.permute.xlu1 %1442  ;;  %v1490_v13 = vld [vmem:[#allocation2 + $0x20] sm:$0x1]  ;;  %v1479_v36 = vld [vmem:[#allocation7 + $0x48] sm:$0xff] }
 0x873   :  { %v1513_v23 = vsel %vm319_vm9, %v1511_v50, %v1512_v53  ;;  %v1491_v8 = vld [vmem:[#allocation2 + $0x28] sm:$0x1]  ;;  %1460 = vst.msk [vmem:[#allocation2 + $0x50] sm:$0x1] %vm263_vm7, %v1443_v57  ;;  %v1514_v48 = vrot.slane %v1490_v13, 1  ;;  %v1478_v50 = vld [vmem:[#allocation7 + $0x40] sm:$0xff] }
 0x874   :  { %3133 = vmatprep.mubr.msk.f32.mxu1 %vm95_vm0, %v1513_v23  ;;  %1461 = vst.msk [vmem:[#allocation2 + $0x58] sm:$0x1] %vm265_vm8, %v1443_v57  ;;  %v1516_v17 = vrot.slane %v1491_v8, 1  ;;  %v1480_v23 = vld [vmem:[#allocation7 + $0x50] sm:$0xff]  ;;  %v1483_v57 = vld [vmem:[#allocation7 + $0x68] sm:$0xff] }
 0x875   :  { %1623 = vmatmul.mubr.f32.vlgmr.msra.gmra.mrb[12].mxu1 %v1510_v45  ;;  %v1515_v25 = vsel %vm319_vm9, %v1509_v59, %v1514_v48  ;;  %v4956_v59 = vpack.c.bf16 %v1479_v36, %v1478_v50  ;;  %v1481_v45 = vld [vmem:[#allocation7 + $0x58] sm:$0xff]  ;;  %v4964_v8 = vpack.c.bf16 %v1483_v57, %v1482_v2  ;;  %v1484_v13 = vld [vmem:[#allocation7 + $0x70] sm:$0xff]  ;;  %v1786_v36 = vld [vmem:[#allocation7 + $0x160] sm:$0xff] }
 0x876   :  { %3746 = vmatpush1.bf16.msra.mxu1 %v4920_v14  ;;  %v1517_v11 = vsel %vm319_vm9, %v1512_v53, %v1516_v17  ;;  %v1492_v19 = vld [vmem:[#allocation2 + $0x30] sm:$0xfe]  ;;  %v1463_v53 = vld [vmem:[#allocation2 + $0x8] sm:$0xff]  ;;  %v4960_v63 = vpack.c.bf16 %v1481_v45, %v1480_v23  ;;  %v1485_v17 = vld [vmem:[#allocation7 + $0x78] sm:$0xff] }
 0x877   :  { %3747 = vmatprep.subr.bf16.mxu1 %v4303_v47  ;;  %3134 = vmatprep.mubr.msk.f32.mxu1 %vm95_vm0, %v1517_v11  ;;  %v1493_v55 = vld [vmem:[#allocation2 + $0x38] sm:$0xfe]  ;;  %v1518_v32 = vrot.slane %v1492_v19, 1  ;;  %v4968_v48 = vpack.c.bf16 %v1485_v17, %v1484_v13  ;;  %v1486_v11 = vld [vmem:[#allocation7 + $0x80] sm:$0xff]  ;;  %v1788_v45 = vld [vmem:[#allocation7 + $0x170] sm:$0xff] }
 0x878   :  { %v4936_v33 = vld [vmem:[#allocation2 + $0x40] sm:$0xff]  ;;  %v1521_v62 = vrot.slane %v1493_v55, 1  ;;  %v1779_v55 = vld [vmem:[#allocation7 + $0x128] sm:$0xff]  ;;  %v1781_v19 = vld [vmem:[#allocation7 + $0x138] sm:$0xff] }
 0x879   :  { %v4934_v38 = vld [vmem:[#allocation2 + $0x48] sm:$0xff]  ;;  %1628 = vmatmul.mubr.f32.gmra.mrb[14].mxu1 %v1515_v25  ;;  %v1519_v28 = vrot.slane %v4936_v33, 1  ;;  %v1467_v61 = vld [vmem:[#allocation2 + $0x38] sm:$0xff]  ;;  %v1790_v13 = vld [vmem:[#allocation7 + $0x180] sm:$0xff] }
 0x87a   :  { %v1522_v10 = vrot.slane %v4934_v38, 1  ;;  %3749 = vmatpush1.bf16.msra.mxu1 %v4928_v1  ;;  %v1494_v20 = vld [vmem:[#allocation2 + $0x50] sm:$0x1]  ;;  %v1487_v25 = vld [vmem:[#allocation7 + $0x88] sm:$0xff]  ;;  %v1789_v2 = vld [vmem:[#allocation7 + $0x178] sm:$0xff] }
 0x87b   :  { %3750 = vmatprep.subr.bf16.mxu1 %v4303_v47  ;;  %v1520_v43 = vsel %vm319_vm9, %v1518_v32, %v1519_v28  ;;  %v1495_v52 = vld [vmem:[#allocation2 + $0x58] sm:$0x1]  ;;  %v1524_v26 = vrot.slane %v1494_v20, 1  ;;  %v4972_v41 = vpack.c.bf16 %v1487_v25, %v1486_v11  ;;  %v1784_v20 = vld [vmem:[#allocation7 + $0x150] sm:$0xff]  ;;  %v5006_v57 = vpack.c.bf16 %v1789_v2, %v1788_v45  ;;  %v1791_v17 = vld [vmem:[#allocation7 + $0x188] sm:$0xff] }
 0x87c   :  { %v1523_v51 = vsel %vm319_vm9, %v1521_v62, %v1522_v10  ;;  %v1526_v5 = vrot.slane %v1495_v52, 1  ;;  %v4976_v62 = vpack.c.bf16 %v1779_v55, %v1778_v29  ;;  %v1739_v52 = vld [vmem:[#allocation2 + $0x8] sm:$0xfc]  ;;  %v5010_v11 = vpack.c.bf16 %v1791_v17, %v1790_v13  ;;  %v1792_v25 = vld [vmem:[#allocation7 + $0x190] sm:$0xff]  ;;  %v1793_v29 = vld [vmem:[#allocation7 + $0x198] sm:$0xff] }
 0x87d   :  { %3135 = vmatprep.mubr.msk.f32.mxu1 %vm95_vm0, %v1523_v51  ;;  %v1525_v46 = vsel %vm319_vm9, %v1519_v28, %v1524_v26  ;;  %v1462_v28 = vld [vmem:[#allocation2] sm:$0xff]  ;;  %v1466_v26 = vld [vmem:[#allocation2 + $0x30] sm:$0xff]  ;;  %v5014_v55 = vpack.c.bf16 %v1793_v29, %v1792_v25  ;;  %v1768_v45 = vrot.slane %v4934_v38, 2  ;;  %v1765_v25 = vrot.slane %v4936_v33, 2 }
 0x87e   :  { %1633 = vmatmul.mubr.f32.gmra.mrb[16].mxu1 %v1520_v43  ;;  %v1527_v16 = vsel %vm319_vm9, %v1522_v10, %v1526_v5  ;;  %v1780_v10 = vld [vmem:[#allocation7 + $0x130] sm:$0xff]  ;;  %v1782_v51 = vld [vmem:[#allocation7 + $0x140] sm:$0xff]  ;;  %v1785_v5 = vld [vmem:[#allocation7 + $0x158] sm:$0xff] }
 0x87f   :  { %3752 = vmatpush1.bf16.msra.mxu1 %v4941_v37  ;;  %3136 = vmatprep.mubr.msk.f32.mxu1 %vm95_vm0, %v1527_v16  ;;  %v4982_v32 = vpack.c.bf16 %v1781_v19, %v1780_v10  ;;  %v4988_v43 = vpack.c.bf16 %v1783_v34, %v1782_v51  ;;  %v1757_v16 = vrot.slane %v1739_v52, 2  ;;  %v4995_v50 = vpack.c.bf16 %v1785_v5, %v1784_v20  ;;  %v1794_v10 = vld [vmem:[#allocation7 + $0x1a0] sm:$0xff]  ;;  %v1795_v19 = vld [vmem:[#allocation7 + $0x1a8] sm:$0xff]  ;;  %v1742_v2 = vld [vmem:[#allocation2 + $0x30] sm:$0xfc] }
 0x880   :  { %3753 = vmatprep.subr.bf16.mxu1 %v4303_v47  ;;  %v5018_v51 = vpack.c.bf16 %v1795_v19, %v1794_v10  ;;  %v1741_v34 = vld [vmem:[#allocation2 + $0x28] sm:$0x3]  ;;  %v1755_v52 = vrot.slane %v4912_v39, 2  ;;  %v1740_v5 = vld [vmem:[#allocation2 + $0x20] sm:$0x3]  ;;  %v1764_v17 = vrot.slane %v1742_v2, 2 }
 0x881   :  { %v1762_v20 = vrot.slane %v1741_v34, 2  ;;  %v1744_v10 = vld [vmem:[#allocation2 + $0x50] sm:$0x3] }
 0x882   :  { %1638 = vmatmul.mubr.f32.gmra.mrb[18].mxu1 %v1525_v46  ;;  %v1758_v46 = vrot.slane %v4910_v0, 2 }
 0x883   :  { %3755 = vmatpush1.bf16.msra.mxu1 %v4948_v35  ;;  %3137 = vmatprep.mubr.msk.f32.mxu1 %vm95_vm0, %v1463_v53  ;;  %v1787_v53 = vld [vmem:[#allocation7 + $0x168] sm:$0xff] }
 0x884   :  { %3756 = vmatprep.subr.bf16.mxu1 %v4303_v47  ;;  %v1759_v23 = vsel %vm567_vm10, %v1757_v16, %v1758_v46 }
 0x887   :  { %3758 = vmatpush1.bf16.msra.mxu1 %v4956_v59 }
 0x888   :  { %3759 = vmatprep.subr.bf16.mxu1 %v4303_v47 }
 0x88b   :  { %3761 = vmatpush1.bf16.msra.mxu1 %v4960_v63 }
 0x88c   :  { %3762 = vmatprep.subr.bf16.mxu1 %v4303_v47 }
 0x88f   :  { %3764 = vmatpush1.bf16.msra.mxu1 %v4964_v8 }
 0x890   :  { %3765 = vmatprep.subr.bf16.mxu1 %v4303_v47 }
 0x893   :  { %3767 = vmatpush1.bf16.msra.mxu1 %v4968_v48 }
 0x894   :  { %3768 = vmatprep.subr.bf16.mxu1 %v4303_v47 }
 0x897   :  { %3770 = vmatpush1.bf16.msra.mxu1 %v4972_v41 }
 0x898   :  { %3771 = vmatprep.subr.bf16.mxu1 %v4303_v47 }
 0x89a   :  { %1718 = vmatmul.mubr.f32.vlgmr.msra.gmra.mrb[12].mxu1 %v1462_v28  ;;  %v1738_v28 = vld [vmem:[#allocation2] sm:$0xfc] }
 0x89b   :  { %3138 = vmatprep.mubr.msk.f32.mxu1 %vm95_vm0, %v4910_v0  ;;  %3773 = vmatpush1.bf16.msra.mxu1 %v4976_v62  ;;  %v5002_v0 = vpack.c.bf16 %v1787_v53, %v1786_v36  ;;  %v1760_v36 = vrot.slane %v1740_v5, 2  ;;  %v1763_v53 = vsel %vm567_vm10, %v1758_v46, %v1762_v20 }
 0x89c   :  { %3774 = vmatprep.subr.bf16.mxu1 %v4303_v47 }
 0x89d   :  { %v1761_v13 = vsel %vm567_vm10, %v1755_v52, %v1760_v36 }
 0x89e   :  { %1723 = vmatmul.mubr.f32.gmra.mrb[14].mxu1 %v4912_v39  ;;  %v1745_v39 = vld [vmem:[#allocation2 + $0x58] sm:$0x3] }
 0x89f   :  { %3139 = vmatprep.mubr.msk.f32.mxu1 %vm95_vm0, %v1467_v61  ;;  %3776 = vmatpush1.bf16.msra.mxu1 %v4982_v32  ;;  %v1754_v61 = vrot.slane %v1738_v28, 2  ;;  %v1772_v46 = vrot.slane %v1745_v39, 2 }
 0x8a0   :  { %3777 = vmatprep.subr.bf16.mxu1 %v4303_v47 }
 0x8a1   :  { %v1756_v16 = vsel %vm567_vm10, %v1754_v61, %v1755_v52  ;;  %v1773_v19 = vsel %vm567_vm10, %v1768_v45, %v1772_v46 }
 0x8a2   :  { %1728 = vmatmul.mubr.f32.gmra.mrb[16].mxu1 %v1466_v26  ;;  %v1743_v26 = vld [vmem:[#allocation2 + $0x38] sm:$0xfc] }
 0x8a3   :  { %3140 = vmatprep.mubr.msk.f32.mxu1 %vm95_vm0, %v4934_v38  ;;  %3779 = vmatpush1.bf16.msra.mxu1 %v4988_v43  ;;  %v1770_v38 = vrot.slane %v1744_v10, 2 }
 0x8a4   :  { %3780 = vmatprep.subr.bf16.mxu1 %v4303_v47 }
 0x8a6   :  { %1733 = vmatmul.mubr.f32.gmra.mrb[18].mxu1 %v4936_v33  ;;  %v1771_v33 = vsel %vm567_vm10, %v1765_v25, %v1770_v38 }
 0x8a7   :  { %3782 = vmatpush1.bf16.msra.mxu1 %v4995_v50  ;;  %3141 = vmatprep.mubr.msk.f32.mxu1 %vm95_vm0, %v1759_v23  ;;  %v1767_v23 = vrot.slane %v1743_v26, 2 }
 0x8a8   :  { %3783 = vmatprep.subr.bf16.mxu1 %v4303_v47 }
 0x8a9   :  { %v1769_v29 = vsel %vm567_vm10, %v1767_v23, %v1768_v45 }
 0x8ab   :  { %3785 = vmatpush1.bf16.msra.mxu1 %v5002_v0 }
 0x8ac   :  { %3786 = vmatprep.subr.bf16.mxu1 %v4303_v47 }
 0x8af   :  { %3788 = vmatpush1.bf16.msra.mxu1 %v5006_v57 }
 0x8b0   :  { %3789 = vmatprep.subr.bf16.mxu1 %v4303_v47 }
 0x8b3   :  { %3791 = vmatpush1.bf16.msra.mxu1 %v5010_v11 }
 0x8b4   :  { %3792 = vmatprep.subr.bf16.mxu1 %v4303_v47 }
 0x8b7   :  { %3794 = vmatpush1.bf16.msra.mxu1 %v5014_v55 }
 0x8b8   :  { %3795 = vmatprep.subr.bf16.mxu1 %v4303_v47 }
 0x8bb   :  { %3797 = vmatpush1.bf16.msra.mxu1 %v5018_v51 }
 0x8bc   :  { %3912 = vmatprep.subr.bf16.mxu1 %v4396_v6 }
 0x8be   :  { %1869 = vmatmul.mubr.f32.vlgmr.msra.gmra.mrb[12].mxu1 %v1756_v16 }
 0x8bf   :  { %3142 = vmatprep.mubr.msk.f32.mxu1 %vm95_vm0, %v1763_v53  ;;  %3914 = vmatpush3.bf16.msra.mxu1 %v4396_v6  ;;  %v1766_v6 = vsel %vm567_vm10, %v1764_v17, %v1765_v25 }
 0x8c0   :  { %3916 = vmatprep.subr.bf16.mxu1 %v4398_v9 }
 0x8c2   :  { %1874 = vmatmul.mubr.f32.gmra.mrb[14].mxu1 %v1761_v13 }
 0x8c3   :  { %3143 = vmatprep.mubr.msk.f32.mxu1 %vm95_vm0, %v1769_v29  ;;  %3918 = vmatpush3.bf16.msra.mxu1 %v4398_v9 }
 0x8c4   :  { %3920 = vmatprep.subr.bf16.mxu1 %v4405_v12 }
 0x8c6   :  { %1879 = vmatmul.mubr.f32.gmra.mrb[16].mxu1 %v1766_v6 }
 0x8c7   :  { %3144 = vmatprep.mubr.msk.f32.mxu1 %vm95_vm0, %v1773_v19  ;;  %3922 = vmatpush3.bf16.msra.mxu1 %v4405_v12 }
 0x8c8   :  { %3924 = vmatprep.subr.bf16.mxu1 %v4409_v15 }
 0x8ca   :  { %1884 = vmatmul.mubr.f32.gmra.mrb[18].mxu1 %v1771_v33 }
 0x8cb   :  { %3926 = vmatpush3.bf16.msra.mxu1 %v4409_v15 }
 0x8cc   :  { %3928 = vmatprep.subr.bf16.mxu1 %v4413_v18 }
 0x8cf   :  { %3930 = vmatpush3.bf16.msra.mxu1 %v4413_v18 }
 0x8d0   :  { %3932 = vmatprep.subr.bf16.mxu1 %v4417_v21 }
 0x8d3   :  { %3934 = vmatpush3.bf16.msra.mxu1 %v4417_v21 }
 0x8d4   :  { %3936 = vmatprep.subr.bf16.mxu1 %v4421_v24 }
 0x8d7   :  { %3938 = vmatpush3.bf16.msra.mxu1 %v4421_v24 }
 0x8d8   :  { %3940 = vmatprep.subr.bf16.mxu1 %v4425_v27 }
 0x8db   :  { %3942 = vmatpush3.bf16.msra.mxu1 %v4425_v27 }
 0x8dc   :  { %3943 = vmatprep.subr.bf16.mxu1 %v4303_v47 }
 0x991   :  { %v1870_v9 = vpop.f32.mrb[12].mxu1 }
 0x992   :  { %v1893_v12 = vmul.f32 %v1870_v9, %v4680_v54  ;;  %v1872_v15 = vpop.f32.mrb[13].mxu1 }
 0x994   :  { %v1897_v18 = vsub.f32 %v4683_v22, %v1893_v12 }
 0x995   :  { %v1875_v28 = vpop.f32.mrb[14].mxu1 }
 0x996   :  { %v1894_v34 = vmul.f32 %v1875_v28, %v4680_v54  ;;  %1901 = vmax.xlane.f32.xlu0 %v1897_v18  ;;  %v1877_v21 = vpop.f32.mrb[15].mxu1 }
 0x998   :  { %v1898_v61 = vsub.f32 %v4687_v49, %v1894_v34 }
 0x999   :  { %v1880_v24 = vpop.f32.mrb[16].mxu1 }
 0x99a   :  { %v1895_v52 = vmul.f32 %v1880_v24, %v4680_v54  ;;  %1903 = vmax.xlane.f32.xlu1 %v1898_v61  ;;  %v1882_v27 = vpop.f32.mrb[17].mxu1 }
 0x99c   :  { %v1899_v20 = vsub.f32 %v4692_v56, %v1895_v52 }
 0x99d   :  { %v1885_v5 = vpop.f32.mrb[18].mxu1 }
 0x99e   :  { %v1896_v26 = vmul.f32 %v1885_v5, %v4680_v54  ;;  %1905 = vmax.xlane.f32.xlu0 %v1899_v20  ;;  %v1887_v16 = vpop.f32.mrb[19].mxu1 }
 0x9a0   :  { %v1900_v36 = vsub.f32 %v4697_v3, %v1896_v26 }
 0x9a2   :  { %1907 = vmax.xlane.f32.xlu0 %v1900_v36 }
 0xa23   :  { %v1902_v53 = vpop.xlane.xlu0 %1901 }
 0xa24   :  { %v1909_v23 = vsub.f32 %v1897_v18, %v1902_v53 }
 0xa26   :  { %v1913_v45 = vmul.f32 1.442695, %v1909_v23 }
 0xa27   :  { %v1904_v2 = vpop.xlane.xlu1 %1903 }
 0xa28   :  { %4157 = vpow2.f32 %v1913_v45  ;;  %v1910_v39 = vsub.f32 %v1898_v61, %v1904_v2 }
 0xa2a   :  { %v1915_v13 = vmul.f32 1.442695, %v1910_v39 }
 0xa2b   :  { %v1906_v17 = vpop.xlane.xlu0 %1905 }
 0xa2c   :  { %4159 = vpow2.f32 %v1915_v13  ;;  %v1911_v25 = vsub.f32 %v1899_v20, %v1906_v17 }
 0xa2e   :  { %v1917_v29 = vmul.f32 1.442695, %v1911_v25 }
 0xa2f   :  { %v1908_v46 = vpop.xlane.xlu0 %1907 }
 0xa30   :  { %4161 = vpow2.f32 %v1917_v29  ;;  %v1912_v10 = vsub.f32 %v1900_v36, %v1908_v46 }
 0xa32   :  { %v4158_v6 = vpop.eup %4157  ;;  %v1919_v38 = vmul.f32 1.442695, %v1912_v10 }
 0xa33   :  { %3415 = vmatprep.mubr.f32.mxu0 %v4158_v6 }
 0xa34   :  { %4163 = vpow2.f32 %v1919_v38 }
 0xa36   :  { %v4160_v19 = vpop.eup %4159 }
 0xa37   :  { %3416 = vmatmul.mubr.f32.vlgmr.msra.gmra.mrb[24].mxu0 %v4160_v19 }
 0xa38   :  { %3832 = vmatpush1.bf16.msra.mxu0 %v4857_v42 }
 0xa39   :  { %3833 = vmatprep.subr.bf16.mxu0 %v4303_v47 }
 0xa3a   :  { %v4162_v33 = vpop.eup %4161 }
 0xa3b   :  { %3418 = vmatprep.mubr.f32.mxu0 %v4162_v33 }
 0xa3c   :  { %3835 = vmatpush1.bf16.msra.mxu0 %v4860_v44 }
 0xa3d   :  { %3836 = vmatprep.subr.bf16.mxu0 %v4303_v47 }
 0xa3e   :  { %v4164_v9 = vpop.eup %4163 }
 0xa3f   :  { %3419 = vmatmul.mubr.f32.gmra.mrb[26].mxu0 %v4164_v9 }
 0xa40   :  { %3838 = vmatpush1.bf16.msra.mxu0 %v4864_v60 }
 0xa41   :  { %3839 = vmatprep.subr.bf16.mxu0 %v4303_v47 }
 0xa44   :  { %3841 = vmatpush1.bf16.msra.mxu0 %v4868_v58 }
 0xa45   :  { %3842 = vmatprep.subr.bf16.mxu0 %v4303_v47 }
 0xa48   :  { %3844 = vmatpush1.bf16.msra.mxu0 %v4872_v4 }
 0xa49   :  { %3845 = vmatprep.subr.bf16.mxu0 %v4303_v47 }
 0xa4c   :  { %3847 = vmatpush1.bf16.msra.mxu0 %v4876_v31 }
 0xa4d   :  { %3848 = vmatprep.subr.bf16.mxu0 %v4303_v47 }
 0xa50   :  { %3850 = vmatpush1.bf16.msra.mxu0 %v4881_v7 }
 0xa51   :  { %3851 = vmatprep.subr.bf16.mxu0 %v4303_v47 }
 0xa54   :  { %3853 = vmatpush1.bf16.msra.mxu0 %v4885_v40 }
 0xa55   :  { %3854 = vmatprep.subr.bf16.mxu0 %v4303_v47 }
 0xa58   :  { %3856 = vmatpush1.bf16.msra.mxu0 %v4890_v30 }
 0xa59   :  { %3857 = vmatprep.subr.bf16.mxu0 %v4303_v47 }
 0xb0a   :  { %v3417_v42 = vpop.f32.mrb[24].mxu0 }
 0xb0b   :  { %4165 = vrcp.f32 %v3417_v42  ;;  %v1987_v44 = vpop.f32.mrb[25].mxu0 }
 0xb0c   :  { %4167 = vrcp.f32 %v1987_v44 }
 0xb12   :  { %v3420_v60 = vpop.f32.mrb[26].mxu0 }
 0xb13   :  { %4169 = vrcp.f32 %v3420_v60  ;;  %v1997_v58 = vpop.f32.mrb[27].mxu0 }
 0xb14   :  { %4171 = vrcp.f32 %v1997_v58 }
 0xb15   :  { %v4166_v4 = vpop.eup %4165 }
 0xb16   :  { %v4168_v31 = vpop.eup %4167  ;;  %v2009_v7 = vmul.f32 %v4166_v4, %v4160_v19 }
 0xb17   :  { %v2007_v12 = vmul.f32 %v4168_v31, %v4158_v6 }
 0xb18   :  { %v2019_v15 = vrot.slane %v2009_v7, 7 }
 0xb19   :  { %v2018_v40 = vrot.slane %v2007_v12, 7 }
 0xb1b   :  { %2024 = vrot.lane.b32.xlu0 %v2018_v40, %s4300_s28  ;;  %v2020_v30 = vsel %vm230_vm2, %v2018_v40, %v2019_v15 }
 0xb1c   :  { %2026 = vrot.lane.b32.xlu1 %v2020_v30, %s4300_s28 }
 0xb1d   :  { %v4170_v18 = vpop.eup %4169 }
 0xb1e   :  { %v4172_v28 = vpop.eup %4171  ;;  %v2013_v34 = vmul.f32 %v4170_v18, %v4164_v9 }
 0xb1f   :  { %v2011_v21 = vmul.f32 %v4172_v28, %v4162_v33 }
 0xb20   :  { %2028 = vrot.lane.b32.xlu1 %v2019_v15, %s4300_s28  ;;  %v2022_v61 = vrot.slane %v2013_v34, 7 }
 0xb21   :  { %v2021_v24 = vrot.slane %v2011_v21, 7 }
 0xb23   :  { %v2023_v52 = vsel %vm230_vm2, %v2021_v24, %v2022_v61 }
 0xb24   :  { %2030 = vrot.lane.b32.xlu1 %v2021_v24, %s4300_s28  ;;  %2032 = vrot.lane.b32.xlu0 %v2023_v52, %s4300_s28 }
 0xb28   :  { %2034 = vrot.lane.b32.xlu1 %v2022_v61, %s4300_s28 }
 0xb8d   :  { %v2025_v27 = vpop.permute.xlu0 %2024 }
 0xb8e   :  { %2042 = vst.msk [vmem:[#allocation2] sm:$0xfe] %vm255_vm3, %v2025_v27  ;;  %v2027_v20 = vpop.permute.xlu1 %2026 }
 0xb8f   :  { %2043 = vst.msk [vmem:[#allocation2 + $0x8] sm:$0xfe] %vm257_vm4, %v2025_v27 }
 0xb90   :  { %2044 = vst.msk [vmem:[#allocation2 + $0x10] sm:$0xff] %vm259_vm5, %v2027_v20 }
 0xb91   :  { %2045 = vst.msk [vmem:[#allocation2 + $0x18] sm:$0xff] %vm261_vm6, %v2027_v20 }
 0xb92   :  { %v2029_v5 = vpop.permute.xlu1 %2028 }
 0xb93   :  { %2046 = vst.msk [vmem:[#allocation2 + $0x20] sm:$0x1] %vm263_vm7, %v2029_v5 }
 0xb94   :  { %2047 = vst.msk [vmem:[#allocation2 + $0x28] sm:$0x1] %vm265_vm8, %v2029_v5 }
 0xb95   :  { %v2080_v16 = vld [vmem:[#allocation2] sm:$0xfe] }
 0xb96   :  { %v2081_v26 = vld [vmem:[#allocation2 + $0x8] sm:$0xfe]  ;;  %v2031_v36 = vpop.permute.xlu1 %2030  ;;  %v2033_v53 = vpop.permute.xlu0 %2032  ;;  %v2100_v39 = vrot.slane %v2080_v16, 1 }
 0xb97   :  { %v2103_v45 = vrot.slane %v2081_v26, 1  ;;  %v5094_v2 = vld [vmem:[#allocation2 + $0x10] sm:$0xff]  ;;  %2048 = vst.msk [vmem:[#allocation2 + $0x30] sm:$0xfe] %vm255_vm3, %v2031_v36  ;;  %v2055_v21 = vld [vmem:[#allocation2 + $0x8] sm:$0xff] }
 0xb98   :  { %v5092_v23 = vld [vmem:[#allocation2 + $0x18] sm:$0xff]  ;;  %2049 = vst.msk [vmem:[#allocation2 + $0x38] sm:$0xfe] %vm257_vm4, %v2031_v36  ;;  %v2101_v17 = vrot.slane %v5094_v2, 1 }
 0xb99   :  { %2050 = vst.msk [vmem:[#allocation2 + $0x40] sm:$0xff] %vm259_vm5, %v2033_v53  ;;  %v2104_v13 = vrot.slane %v5092_v23, 1 }
 0xb9a   :  { %2051 = vst.msk [vmem:[#allocation2 + $0x48] sm:$0xff] %vm261_vm6, %v2033_v53  ;;  %v2102_v29 = vsel %vm319_vm9, %v2100_v39, %v2101_v17  ;;  %v2035_v46 = vpop.permute.xlu1 %2034  ;;  %v2082_v6 = vld [vmem:[#allocation2 + $0x20] sm:$0x1] }
 0xb9b   :  { %v2105_v25 = vsel %vm319_vm9, %v2103_v45, %v2104_v13  ;;  %v2083_v10 = vld [vmem:[#allocation2 + $0x28] sm:$0x1]  ;;  %2052 = vst.msk [vmem:[#allocation2 + $0x50] sm:$0x1] %vm263_vm7, %v2035_v46  ;;  %v2106_v19 = vrot.slane %v2082_v6, 1 }
 0xb9c   :  { %3145 = vmatprep.mubr.msk.f32.mxu0 %vm95_vm0, %v2105_v25  ;;  %2053 = vst.msk [vmem:[#allocation2 + $0x58] sm:$0x1] %vm265_vm8, %v2035_v46  ;;  %v2108_v38 = vrot.slane %v2083_v10, 1  ;;  %v2332_v61 = vld [vmem:[#allocation2 + $0x20] sm:$0x3] }
 0xb9d   :  { %2215 = vmatmul.mubr.f32.vlgmr.msra.gmra.mrb[28].mxu0 %v2102_v29  ;;  %v2107_v9 = vsel %vm319_vm9, %v2101_v17, %v2106_v19  ;;  %v2352_v52 = vrot.slane %v2332_v61, 2  ;;  %v2721_v61 = vld [vmem:[#allocation7 + $0xb8] sm:$0xff] }
 0xb9e   :  { %3859 = vmatpush1.bf16.msra.mxu0 %v4920_v14  ;;  %v2109_v33 = vsel %vm319_vm9, %v2104_v13, %v2108_v38  ;;  %v2084_v31 = vld [vmem:[#allocation2 + $0x30] sm:$0xfe] }
 0xb9f   :  { %3860 = vmatprep.subr.bf16.mxu0 %v4303_v47  ;;  %3146 = vmatprep.mubr.msk.f32.mxu0 %vm95_vm0, %v2109_v33  ;;  %v2085_v44 = vld [vmem:[#allocation2 + $0x38] sm:$0xfe]  ;;  %v2110_v7 = vrot.slane %v2084_v31, 1  ;;  %v2334_v20 = vld [vmem:[#allocation2 + $0x30] sm:$0xfc] }
 0xba0   :  { %v5114_v60 = vld [vmem:[#allocation2 + $0x40] sm:$0xff]  ;;  %v2113_v58 = vrot.slane %v2085_v44, 1  ;;  %v2356_v16 = vrot.slane %v2334_v20, 2 }
 0xba1   :  { %v5112_v42 = vld [vmem:[#allocation2 + $0x48] sm:$0xff]  ;;  %2220 = vmatmul.mubr.f32.gmra.mrb[30].mxu0 %v2107_v9  ;;  %v2111_v14 = vrot.slane %v5114_v60, 1  ;;  %v2357_v36 = vrot.slane %v5114_v60, 2 }
 0xba2   :  { %v2114_v4 = vrot.slane %v5112_v42, 1  ;;  %3862 = vmatpush1.bf16.msra.mxu0 %v4928_v1  ;;  %v2086_v30 = vld [vmem:[#allocation2 + $0x50] sm:$0x1] }
 0xba3   :  { %3863 = vmatprep.subr.bf16.mxu0 %v4303_v47  ;;  %v2112_v15 = vsel %vm319_vm9, %v2110_v7, %v2111_v14  ;;  %v2087_v40 = vld [vmem:[#allocation2 + $0x58] sm:$0x1]  ;;  %v2116_v28 = vrot.slane %v2086_v30, 1  ;;  %v2358_v45 = vsel %vm567_vm10, %v2356_v16, %v2357_v36 }
 0xba4   :  { %v2115_v12 = vsel %vm319_vm9, %v2113_v58, %v2114_v4  ;;  %v2118_v18 = vrot.slane %v2087_v40, 1  ;;  %v2337_v5 = vld [vmem:[#allocation2 + $0x58] sm:$0x3] }
 0xba5   :  { %3147 = vmatprep.mubr.msk.f32.mxu0 %vm95_vm0, %v2115_v12  ;;  %v2117_v1 = vsel %vm319_vm9, %v2111_v14, %v2116_v28  ;;  %v2364_v53 = vrot.slane %v2337_v5, 2  ;;  %v2726_v5 = vld [vmem:[#allocation7 + $0xe0] sm:$0xff] }
 0xba6   :  { %2225 = vmatmul.mubr.f32.gmra.mrb[32].mxu0 %v2112_v15  ;;  %v2119_v34 = vsel %vm319_vm9, %v2114_v4, %v2118_v18 }
 0xba7   :  { %3865 = vmatpush1.bf16.msra.mxu0 %v4941_v37  ;;  %3148 = vmatprep.mubr.msk.f32.mxu0 %vm95_vm0, %v2119_v34  ;;  %v2054_v37 = vld [vmem:[#allocation2] sm:$0xff] }
 0xba8   :  { %3866 = vmatprep.subr.bf16.mxu0 %v4303_v47 }
 0xbaa   :  { %2230 = vmatmul.mubr.f32.gmra.mrb[34].mxu0 %v2117_v1 }
 0xbab   :  { %3868 = vmatpush1.bf16.msra.mxu0 %v4948_v35  ;;  %3149 = vmatprep.mubr.msk.f32.mxu0 %vm95_vm0, %v2055_v21  ;;  %v2059_v35 = vld [vmem:[#allocation2 + $0x38] sm:$0xff] }
 0xbac   :  { %3869 = vmatprep.subr.bf16.mxu0 %v4303_v47 }
 0xbaf   :  { %3871 = vmatpush1.bf16.msra.mxu0 %v4956_v59  ;;  %v2331_v59 = vld [vmem:[#allocation2 + $0x8] sm:$0xfc] }
 0xbb0   :  { %3872 = vmatprep.subr.bf16.mxu0 %v4303_v47 }
 0xbb3   :  { %3874 = vmatpush1.bf16.msra.mxu0 %v4960_v63  ;;  %v2058_v63 = vld [vmem:[#allocation2 + $0x30] sm:$0xff] }
 0xbb4   :  { %3875 = vmatprep.subr.bf16.mxu0 %v4303_v47 }
 0xbb7   :  { %3877 = vmatpush1.bf16.msra.mxu0 %v4964_v8  ;;  %v2349_v8 = vrot.slane %v2331_v59, 2 }
 0xbb8   :  { %3878 = vmatprep.subr.bf16.mxu0 %v4303_v47 }
 0xbbb   :  { %3880 = vmatpush1.bf16.msra.mxu0 %v4968_v48  ;;  %v2350_v48 = vrot.slane %v5092_v23, 2 }
 0xbbc   :  { %3881 = vmatprep.subr.bf16.mxu0 %v4303_v47 }
 0xbbf   :  { %3883 = vmatpush1.bf16.msra.mxu0 %v4972_v41  ;;  %v2351_v41 = vsel %vm567_vm10, %v2349_v8, %v2350_v48 }
 0xbc0   :  { %3884 = vmatprep.subr.bf16.mxu0 %v4303_v47 }
 0xbc2   :  { %2310 = vmatmul.mubr.f32.vlgmr.msra.gmra.mrb[28].mxu0 %v2054_v37 }
 0xbc3   :  { %3150 = vmatprep.mubr.msk.f32.mxu0 %vm95_vm0, %v5092_v23  ;;  %3886 = vmatpush1.bf16.msra.mxu0 %v4976_v62  ;;  %v2330_v62 = vld [vmem:[#allocation2] sm:$0xfc]  ;;  %v2336_v23 = vld [vmem:[#allocation2 + $0x50] sm:$0x3] }
 0xbc4   :  { %3887 = vmatprep.subr.bf16.mxu0 %v4303_v47 }
 0xbc6   :  { %2315 = vmatmul.mubr.f32.gmra.mrb[30].mxu0 %v5094_v2 }
 0xbc7   :  { %3151 = vmatprep.mubr.msk.f32.mxu0 %vm95_vm0, %v2059_v35  ;;  %3889 = vmatpush1.bf16.msra.mxu0 %v4982_v32  ;;  %v2333_v32 = vld [vmem:[#allocation2 + $0x28] sm:$0x3] }
 0xbc8   :  { %3890 = vmatprep.subr.bf16.mxu0 %v4303_v47 }
 0xbca   :  { %2320 = vmatmul.mubr.f32.gmra.mrb[32].mxu0 %v2058_v63 }
 0xbcb   :  { %3152 = vmatprep.mubr.msk.f32.mxu0 %vm95_vm0, %v5112_v42  ;;  %3892 = vmatpush1.bf16.msra.mxu0 %v4988_v43  ;;  %v2346_v43 = vrot.slane %v2330_v62, 2  ;;  %v2718_v62 = vld [vmem:[#allocation7 + $0xa0] sm:$0xff] }
 0xbcc   :  { %3893 = vmatprep.subr.bf16.mxu0 %v4303_v47 }
 0xbce   :  { %2325 = vmatmul.mubr.f32.gmra.mrb[34].mxu0 %v5114_v60 }
 0xbcf   :  { %3895 = vmatpush1.bf16.msra.mxu0 %v4995_v50  ;;  %3153 = vmatprep.mubr.msk.f32.mxu0 %vm95_vm0, %v2351_v41  ;;  %v2347_v50 = vrot.slane %v5094_v2, 2  ;;  %v2362_v2 = vrot.slane %v2336_v23, 2  ;;  %v2717_v41 = vld [vmem:[#allocation7 + $0x98] sm:$0xff] }
 0xbd0   :  { %3896 = vmatprep.subr.bf16.mxu0 %v4303_v47  ;;  %v2729_v23 = vld [vmem:[#allocation7 + $0xf8] sm:$0xff] }
 0xbd1   :  { %v2348_v24 = vsel %vm567_vm10, %v2346_v43, %v2347_v50  ;;  %v2353_v26 = vsel %vm567_vm10, %v2347_v50, %v2352_v52  ;;  %v2363_v13 = vsel %vm567_vm10, %v2357_v36, %v2362_v2  ;;  %v2719_v43 = vld [vmem:[#allocation7 + $0xa8] sm:$0xff] }
 0xbd2   :  { %v3947_v50 = vpack.c.bf16 %v2719_v43, %v2718_v62  ;;  %v2723_v52 = vld [vmem:[#allocation7 + $0xc8] sm:$0xff] }
 0xbd3   :  { %3898 = vmatpush1.bf16.msra.mxu0 %v5002_v0  ;;  %v2354_v0 = vrot.slane %v2333_v32, 2 }
 0xbd4   :  { %3899 = vmatprep.subr.bf16.mxu0 %v4303_v47 }
 0xbd7   :  { %3901 = vmatpush1.bf16.msra.mxu0 %v5006_v57  ;;  %v2335_v57 = vld [vmem:[#allocation2 + $0x38] sm:$0xfc] }
 0xbd8   :  { %3902 = vmatprep.subr.bf16.mxu0 %v4303_v47  ;;  %v2359_v27 = vrot.slane %v2335_v57, 2 }
 0xbdb   :  { %3904 = vmatpush1.bf16.msra.mxu0 %v5010_v11  ;;  %v2355_v11 = vsel %vm567_vm10, %v2350_v48, %v2354_v0  ;;  %v2716_v48 = vld [vmem:[#allocation7 + $0x90] sm:$0xff] }
 0xbdc   :  { %3905 = vmatprep.subr.bf16.mxu0 %v4303_v47  ;;  %v3944_v32 = vpack.c.bf16 %v2717_v41, %v2716_v48  ;;  %v2720_v0 = vld [vmem:[#allocation7 + $0xb0] sm:$0xff] }
 0xbdd   :  { %v3950_v57 = vpack.c.bf16 %v2721_v61, %v2720_v0  ;;  %v2657_v0 = vld [vmem:[#allocation7 + $0x18] sm:$0xff] }
 0xbdf   :  { %3907 = vmatpush1.bf16.msra.mxu0 %v5014_v55  ;;  %v2360_v55 = vrot.slane %v5112_v42, 2 }
 0xbe0   :  { %3908 = vmatprep.subr.bf16.mxu0 %v4303_v47 }
 0xbe1   :  { %v2365_v39 = vsel %vm567_vm10, %v2360_v55, %v2364_v53  ;;  %v2728_v53 = vld [vmem:[#allocation7 + $0xf0] sm:$0xff] }
 0xbe3   :  { %3910 = vmatpush1.bf16.msra.mxu0 %v5018_v51  ;;  %v2361_v51 = vsel %vm567_vm10, %v2359_v27, %v2360_v55  ;;  %v2724_v27 = vld [vmem:[#allocation7 + $0xd0] sm:$0xff]  ;;  %v2725_v55 = vld [vmem:[#allocation7 + $0xd8] sm:$0xff] }
 0xbe4   :  { %v3956_v20 = vpack.c.bf16 %v2725_v55, %v2724_v27 }
 0xbe6   :  { %2461 = vmatmul.mubr.f32.vlgmr.msra.gmra.mrb[28].mxu0 %v2348_v24  ;;  %v2722_v24 = vld [vmem:[#allocation7 + $0xc0] sm:$0xff] }
 0xbe7   :  { %3154 = vmatprep.mubr.msk.f32.mxu0 %vm95_vm0, %v2355_v11  ;;  %v3953_v11 = vpack.c.bf16 %v2723_v52, %v2722_v24 }
 0xbea   :  { %2466 = vmatmul.mubr.f32.gmra.mrb[30].mxu0 %v2353_v26  ;;  %v2727_v26 = vld [vmem:[#allocation7 + $0xe8] sm:$0xff] }
 0xbeb   :  { %3155 = vmatprep.mubr.msk.f32.mxu0 %vm95_vm0, %v2361_v51  ;;  %v3959_v16 = vpack.c.bf16 %v2727_v26, %v2726_v5  ;;  %v2658_v5 = vld [vmem:[#allocation7 + $0x20] sm:$0xff]  ;;  %v2659_v26 = vld [vmem:[#allocation7 + $0x28] sm:$0xff] }
 0xbee   :  { %2471 = vmatmul.mubr.f32.gmra.mrb[32].mxu0 %v2358_v45  ;;  %v3962_v45 = vpack.c.bf16 %v2729_v23, %v2728_v53 }
 0xbef   :  { %3156 = vmatprep.mubr.msk.f32.mxu0 %vm95_vm0, %v2365_v39  ;;  %v2730_v39 = vld [vmem:[#allocation7 + $0x100] sm:$0xff] }
 0xbf2   :  { %2476 = vmatmul.mubr.f32.gmra.mrb[34].mxu0 %v2363_v13  ;;  %v2731_v13 = vld [vmem:[#allocation7 + $0x108] sm:$0xff] }
 0xcb9   :  { %v2462_v17 = vpop.f32.mrb[28].mxu0 }
 0xcba   :  { %v2485_v25 = vmul.f32 %v2462_v17, %v4680_v54  ;;  %v2464_v29 = vpop.f32.mrb[29].mxu0 }
 0xcbc   :  { %v2489_v46 = vsub.f32 %v4683_v22, %v2485_v25  ;;  %v3965_v25 = vpack.c.bf16 %v2731_v13, %v2730_v39  ;;  %v3977_v13 = vpack.c.bf16 %v2659_v26, %v2658_v5  ;;  %v2970_v5 = vld [vmem:[#allocation7 + $0x160] sm:$0xff]  ;;  %v2971_v26 = vld [vmem:[#allocation7 + $0x168] sm:$0xff] }
 0xcbd   :  { %v2467_v10 = vpop.f32.mrb[30].mxu0 }
 0xcbe   :  { %v2486_v6 = vmul.f32 %v2467_v10, %v4680_v54  ;;  %2493 = vmax.xlane.f32.xlu0 %v2489_v46  ;;  %v2469_v38 = vpop.f32.mrb[31].mxu0 }
 0xcbf   :  { %v2733_v38 = vld [vmem:[#allocation7 + $0x118] sm:$0xff] }
 0xcc0   :  { %v2490_v19 = vsub.f32 %v4687_v49, %v2486_v6  ;;  %v2732_v6 = vld [vmem:[#allocation7 + $0x110] sm:$0xff] }
 0xcc1   :  { %v2472_v33 = vpop.f32.mrb[32].mxu0 }
 0xcc2   :  { %v2487_v9 = vmul.f32 %v2472_v33, %v4680_v54  ;;  %2495 = vmax.xlane.f32.xlu1 %v2490_v19  ;;  %v2474_v42 = vpop.f32.mrb[33].mxu0  ;;  %v3968_v33 = vpack.c.bf16 %v2733_v38, %v2732_v6 }
 0xcc4   :  { %v2491_v44 = vsub.f32 %v4692_v56, %v2487_v9 }
 0xcc5   :  { %v2477_v60 = vpop.f32.mrb[34].mxu0 }
 0xcc6   :  { %v2488_v58 = vmul.f32 %v2477_v60, %v4680_v54  ;;  %2497 = vmax.xlane.f32.xlu0 %v2491_v44  ;;  %v2479_v4 = vpop.f32.mrb[35].mxu0 }
 0xcc8   :  { %v2492_v31 = vsub.f32 %v4697_v3, %v2488_v58 }
 0xcca   :  { %2499 = vmax.xlane.f32.xlu0 %v2492_v31 }
 0xd4b   :  { %v2494_v14 = vpop.xlane.xlu0 %2493 }
 0xd4c   :  { %v2501_v7 = vsub.f32 %v2489_v46, %v2494_v14 }
 0xd4e   :  { %v2505_v12 = vmul.f32 1.442695, %v2501_v7 }
 0xd4f   :  { %v2496_v15 = vpop.xlane.xlu1 %2495 }
 0xd50   :  { %4173 = vpow2.f32 %v2505_v12  ;;  %v2502_v40 = vsub.f32 %v2490_v19, %v2496_v15 }
 0xd52   :  { %v2507_v30 = vmul.f32 1.442695, %v2502_v40 }
 0xd53   :  { %v2498_v18 = vpop.xlane.xlu0 %2497 }
 0xd54   :  { %4175 = vpow2.f32 %v2507_v30  ;;  %v2503_v28 = vsub.f32 %v2491_v44, %v2498_v18  ;;  %v2654_v18 = vld [vmem:[#allocation7] sm:$0xff] }
 0xd56   :  { %v2509_v34 = vmul.f32 1.442695, %v2503_v28 }
 0xd57   :  { %v2500_v1 = vpop.xlane.xlu0 %2499 }
 0xd58   :  { %4177 = vpow2.f32 %v2509_v34  ;;  %v2504_v21 = vsub.f32 %v2492_v31, %v2500_v1  ;;  %v2655_v1 = vld [vmem:[#allocation7 + $0x8] sm:$0xff] }
 0xd59   :  { %v3971_v62 = vpack.c.bf16 %v2655_v1, %v2654_v18  ;;  %v2669_v18 = vld [vmem:[#allocation7 + $0x78] sm:$0xff]  ;;  %v2671_v1 = vld [vmem:[#allocation7 + $0x88] sm:$0xff] }
 0xd5a   :  { %v5189_v37 = vpop.eup %4173  ;;  %v2511_v35 = vmul.f32 1.442695, %v2504_v21 }
 0xd5b   :  { %3453 = vmatprep.mubr.f32.mxu1 %v5189_v37 }
 0xd5c   :  { %4179 = vpow2.f32 %v2511_v35 }
 0xd5e   :  { %v4176_v59 = vpop.eup %4175 }
 0xd5f   :  { %3454 = vmatmul.mubr.f32.vlgmr.msra.gmra.mrb[20].mxu1 %v4176_v59 }
 0xd60   :  { %3945 = vmatpush1.bf16.msra.mxu1 %v3944_v32 }
 0xd61   :  { %3946 = vmatprep.subr.bf16.mxu1 %v4303_v47 }
 0xd62   :  { %v5192_v63 = vpop.eup %4177 }
 0xd63   :  { %3456 = vmatprep.mubr.f32.mxu1 %v5192_v63 }
 0xd64   :  { %3948 = vmatpush1.bf16.msra.mxu1 %v3947_v50  ;;  %v2656_v50 = vld [vmem:[#allocation7 + $0x10] sm:$0xff] }
 0xd65   :  { %3949 = vmatprep.subr.bf16.mxu1 %v4303_v47  ;;  %v3974_v27 = vpack.c.bf16 %v2657_v0, %v2656_v50  ;;  %v2967_v50 = vld [vmem:[#allocation7 + $0x148] sm:$0xff] }
 0xd66   :  { %v5195_v8 = vpop.eup %4179 }
 0xd67   :  { %3457 = vmatmul.mubr.f32.gmra.mrb[22].mxu1 %v5195_v8 }
 0xd68   :  { %3951 = vmatpush1.bf16.msra.mxu1 %v3950_v57 }
 0xd69   :  { %3952 = vmatprep.subr.bf16.mxu1 %v4303_v47 }
 0xd6c   :  { %3954 = vmatpush1.bf16.msra.mxu1 %v3953_v11 }
 0xd6d   :  { %3955 = vmatprep.subr.bf16.mxu1 %v4303_v47 }
 0xd70   :  { %3957 = vmatpush1.bf16.msra.mxu1 %v3956_v20 }
 0xd71   :  { %3958 = vmatprep.subr.bf16.mxu1 %v4303_v47 }
 0xd74   :  { %3960 = vmatpush1.bf16.msra.mxu1 %v3959_v16 }
 0xd75   :  { %3961 = vmatprep.subr.bf16.mxu1 %v4303_v47 }
 0xd78   :  { %3963 = vmatpush1.bf16.msra.mxu1 %v3962_v45 }
 0xd79   :  { %3964 = vmatprep.subr.bf16.mxu1 %v4303_v47 }
 0xd7c   :  { %3966 = vmatpush1.bf16.msra.mxu1 %v3965_v25  ;;  %v2660_v25 = vld [vmem:[#allocation7 + $0x30] sm:$0xff] }
 0xd7d   :  { %3967 = vmatprep.subr.bf16.mxu1 %v4303_v47 }
 0xd80   :  { %3969 = vmatpush1.bf16.msra.mxu1 %v3968_v33 }
 0xd81   :  { %3970 = vmatprep.subr.bf16.mxu1 %v4303_v47 }
 0xe32   :  { %v3455_v36 = vpop.f32.mrb[20].mxu1 }
 0xe33   :  { %4181 = vrcp.f32 %v3455_v36  ;;  %v2579_v51 = vpop.f32.mrb[21].mxu1 }
 0xe34   :  { %4183 = vrcp.f32 %v2579_v51 }
 0xe3a   :  { %v3458_v2 = vpop.f32.mrb[22].mxu1 }
 0xe3b   :  { %4185 = vrcp.f32 %v3458_v2  ;;  %v2589_v17 = vpop.f32.mrb[23].mxu1 }
 0xe3c   :  { %4187 = vrcp.f32 %v2589_v17 }
 0xe3d   :  { %v4182_v29 = vpop.eup %4181 }
 0xe3e   :  { %v4184_v46 = vpop.eup %4183  ;;  %v2601_v10 = vmul.f32 %v4182_v29, %v4176_v59  ;;  %v2661_v29 = vld [vmem:[#allocation7 + $0x38] sm:$0xff] }
 0xe3f   :  { %v2599_v19 = vmul.f32 %v4184_v46, %v5189_v37  ;;  %v3980_v33 = vpack.c.bf16 %v2661_v29, %v2660_v25  ;;  %v2977_v25 = vld [vmem:[#allocation7 + $0x198] sm:$0xff] }
 0xe40   :  { %v2611_v9 = vrot.slane %v2601_v10, 7 }
 0xe41   :  { %v2610_v42 = vrot.slane %v2599_v19, 7 }
 0xe43   :  { %2616 = vrot.lane.b32.xlu0 %v2610_v42, %s4300_s28  ;;  %v2612_v44 = vsel %vm230_vm2, %v2610_v42, %v2611_v9 }
 0xe44   :  { %2618 = vrot.lane.b32.xlu1 %v2612_v44, %s4300_s28  ;;  %v2662_v44 = vld [vmem:[#allocation7 + $0x40] sm:$0xff] }
 0xe45   :  { %v4186_v60 = vpop.eup %4185 }
 0xe46   :  { %v4188_v58 = vpop.eup %4187  ;;  %v2605_v4 = vmul.f32 %v4186_v60, %v5195_v8  ;;  %v2663_v60 = vld [vmem:[#allocation7 + $0x48] sm:$0xff] }
 0xe47   :  { %v2603_v31 = vmul.f32 %v4188_v58, %v5192_v63 }
 0xe48   :  { %2620 = vrot.lane.b32.xlu1 %v2611_v9, %s4300_s28  ;;  %v2614_v14 = vrot.slane %v2605_v4, 7  ;;  %v3983_v4 = vpack.c.bf16 %v2663_v60, %v2662_v44 }
 0xe49   :  { %v2613_v7 = vrot.slane %v2603_v31, 7  ;;  %v2664_v31 = vld [vmem:[#allocation7 + $0x50] sm:$0xff] }
 0xe4b   :  { %v2615_v12 = vsel %vm230_vm2, %v2613_v7, %v2614_v14 }
 0xe4c   :  { %2622 = vrot.lane.b32.xlu1 %v2613_v7, %s4300_s28  ;;  %2624 = vrot.lane.b32.xlu0 %v2615_v12, %s4300_s28  ;;  %v2666_v12 = vld [vmem:[#allocation7 + $0x60] sm:$0xff] }
 0xe50   :  { %2626 = vrot.lane.b32.xlu1 %v2614_v14, %s4300_s28  ;;  %v2665_v14 = vld [vmem:[#allocation7 + $0x58] sm:$0xff] }
 0xe51   :  { %v3986_v7 = vpack.c.bf16 %v2665_v14, %v2664_v31 }
 0xeb5   :  { %v2617_v15 = vpop.permute.xlu0 %2616 }
 0xeb6   :  { %2634 = vst.msk [vmem:[#allocation2] sm:$0xfe] %vm255_vm3, %v2617_v15  ;;  %v2619_v40 = vpop.permute.xlu1 %2618 }
 0xeb7   :  { %2635 = vst.msk [vmem:[#allocation2 + $0x8] sm:$0xfe] %vm257_vm4, %v2617_v15  ;;  %v2667_v15 = vld [vmem:[#allocation7 + $0x68] sm:$0xff] }
 0xeb8   :  { %2636 = vst.msk [vmem:[#allocation2 + $0x10] sm:$0xff] %vm259_vm5, %v2619_v40 }
 0xeb9   :  { %2637 = vst.msk [vmem:[#allocation2 + $0x18] sm:$0xff] %vm261_vm6, %v2619_v40  ;;  %v3989_v40 = vpack.c.bf16 %v2667_v15, %v2666_v12 }
 0xeba   :  { %v2621_v30 = vpop.permute.xlu1 %2620 }
 0xebb   :  { %2638 = vst.msk [vmem:[#allocation2 + $0x20] sm:$0x1] %vm263_vm7, %v2621_v30 }
 0xebc   :  { %2639 = vst.msk [vmem:[#allocation2 + $0x28] sm:$0x1] %vm265_vm8, %v2621_v30  ;;  %v2668_v30 = vld [vmem:[#allocation7 + $0x70] sm:$0xff] }
 0xebd   :  { %v2672_v34 = vld [vmem:[#allocation2] sm:$0xfe] }
 0xebe   :  { %v2673_v28 = vld [vmem:[#allocation2 + $0x8] sm:$0xfe]  ;;  %v2623_v21 = vpop.permute.xlu1 %2622  ;;  %v2625_v37 = vpop.permute.xlu0 %2624  ;;  %v2692_v8 = vrot.slane %v2672_v34, 1  ;;  %v2670_v34 = vld [vmem:[#allocation7 + $0x80] sm:$0xff] }
 0xebf   :  { %v2695_v59 = vrot.slane %v2673_v28, 1  ;;  %v5226_v63 = vld [vmem:[#allocation2 + $0x10] sm:$0xff]  ;;  %2640 = vst.msk [vmem:[#allocation2 + $0x30] sm:$0xfe] %vm255_vm3, %v2623_v21  ;;  %v2647_v58 = vld [vmem:[#allocation2 + $0x8] sm:$0xff]  ;;  %v3992_v28 = vpack.c.bf16 %v2669_v18, %v2668_v30 }
 0xec0   :  { %v5224_v35 = vld [vmem:[#allocation2 + $0x18] sm:$0xff]  ;;  %2641 = vst.msk [vmem:[#allocation2 + $0x38] sm:$0xfe] %vm257_vm4, %v2623_v21  ;;  %v2693_v41 = vrot.slane %v5226_v63, 1  ;;  %v3995_v21 = vpack.c.bf16 %v2671_v1, %v2670_v34 }
 0xec1   :  { %2642 = vst.msk [vmem:[#allocation2 + $0x40] sm:$0xff] %vm259_vm5, %v2625_v37  ;;  %v2696_v48 = vrot.slane %v5224_v35, 1 }
 0xec2   :  { %2643 = vst.msk [vmem:[#allocation2 + $0x48] sm:$0xff] %vm261_vm6, %v2625_v37  ;;  %v2694_v43 = vsel %vm319_vm9, %v2692_v8, %v2693_v41  ;;  %v2627_v61 = vpop.permute.xlu1 %2626  ;;  %v2674_v24 = vld [vmem:[#allocation2 + $0x20] sm:$0x1] }
 0xec3   :  { %v2697_v32 = vsel %vm319_vm9, %v2695_v59, %v2696_v48  ;;  %v2675_v57 = vld [vmem:[#allocation2 + $0x28] sm:$0x1]  ;;  %2644 = vst.msk [vmem:[#allocation2 + $0x50] sm:$0x1] %vm263_vm7, %v2627_v61  ;;  %v2698_v11 = vrot.slane %v2674_v24, 1  ;;  %v2962_v37 = vld [vmem:[#allocation7 + $0x120] sm:$0xff] }
 0xec4   :  { %3157 = vmatprep.mubr.msk.f32.mxu1 %vm95_vm0, %v2697_v32  ;;  %2645 = vst.msk [vmem:[#allocation2 + $0x58] sm:$0x1] %vm265_vm8, %v2627_v61  ;;  %v2700_v52 = vrot.slane %v2675_v57, 1  ;;  %v2963_v59 = vld [vmem:[#allocation7 + $0x128] sm:$0xff]  ;;  %v2968_v24 = vld [vmem:[#allocation7 + $0x150] sm:$0xff] }
 0xec5   :  { %2807 = vmatmul.mubr.f32.vlgmr.msra.gmra.mrb[24].mxu1 %v2694_v43  ;;  %v2699_v20 = vsel %vm319_vm9, %v2693_v41, %v2698_v11  ;;  %v3998_v8 = vpack.c.bf16 %v2963_v59, %v2962_v37  ;;  %v2965_v41 = vld [vmem:[#allocation7 + $0x138] sm:$0xff]  ;;  %v2966_v43 = vld [vmem:[#allocation7 + $0x140] sm:$0xff]  ;;  %v2923_v57 = vld [vmem:[#allocation2 + $0x8] sm:$0xfc] }
 0xec6   :  { %3972 = vmatpush1.bf16.msra.mxu1 %v3971_v62  ;;  %v2701_v55 = vsel %vm319_vm9, %v2696_v48, %v2700_v52  ;;  %v2676_v45 = vld [vmem:[#allocation2 + $0x30] sm:$0xfe]  ;;  %v2646_v62 = vld [vmem:[#allocation2] sm:$0xff]  ;;  %v4004_v61 = vpack.c.bf16 %v2967_v50, %v2966_v43  ;;  %v2969_v52 = vld [vmem:[#allocation7 + $0x158] sm:$0xff] }
 0xec7   :  { %3973 = vmatprep.subr.bf16.mxu1 %v4303_v47  ;;  %3158 = vmatprep.mubr.msk.f32.mxu1 %vm95_vm0, %v2701_v55  ;;  %v2677_v36 = vld [vmem:[#allocation2 + $0x38] sm:$0xfe]  ;;  %v2702_v39 = vrot.slane %v2676_v45, 1  ;;  %v2964_v48 = vld [vmem:[#allocation7 + $0x130] sm:$0xff]  ;;  %v2942_v55 = vrot.slane %v5224_v35, 2 }
 0xec8   :  { %v5245_v51 = vld [vmem:[#allocation2 + $0x40] sm:$0xff]  ;;  %v2705_v53 = vrot.slane %v2677_v36, 1  ;;  %v4001_v32 = vpack.c.bf16 %v2965_v41, %v2964_v48  ;;  %v2651_v0 = vld [vmem:[#allocation2 + $0x38] sm:$0xff]  ;;  %v2650_v11 = vld [vmem:[#allocation2 + $0x30] sm:$0xff] }
 0xec9   :  { %v5243_v16 = vld [vmem:[#allocation2 + $0x48] sm:$0xff]  ;;  %2812 = vmatmul.mubr.f32.gmra.mrb[26].mxu1 %v2699_v20  ;;  %v2703_v2 = vrot.slane %v5245_v51, 1  ;;  %v4007_v20 = vpack.c.bf16 %v2969_v52, %v2968_v24  ;;  %v2924_v44 = vld [vmem:[#allocation2 + $0x20] sm:$0x3]  ;;  %v2927_v60 = vld [vmem:[#allocation2 + $0x38] sm:$0xfc] }
 0xeca   :  { %v2706_v23 = vrot.slane %v5243_v16, 1  ;;  %3975 = vmatpush1.bf16.msra.mxu1 %v3974_v27  ;;  %v2678_v6 = vld [vmem:[#allocation2 + $0x50] sm:$0x1]  ;;  %v2941_v27 = vrot.slane %v2923_v57, 2  ;;  %v2951_v14 = vrot.slane %v2927_v60, 2 }
 0xecb   :  { %3976 = vmatprep.subr.bf16.mxu1 %v4303_v47  ;;  %v2704_v46 = vsel %vm319_vm9, %v2702_v39, %v2703_v2  ;;  %v2679_v10 = vld [vmem:[#allocation2 + $0x58] sm:$0x1]  ;;  %v2708_v19 = vrot.slane %v2678_v6, 1  ;;  %v2975_v39 = vld [vmem:[#allocation7 + $0x188] sm:$0xff]  ;;  %v2922_v6 = vld [vmem:[#allocation2] sm:$0xfc] }
 0xecc   :  { %v2707_v17 = vsel %vm319_vm9, %v2705_v53, %v2706_v23  ;;  %v2710_v38 = vrot.slane %v2679_v10, 1  ;;  %v2943_v36 = vsel %vm567_vm10, %v2941_v27, %v2942_v55  ;;  %v4010_v53 = vpack.c.bf16 %v2971_v26, %v2970_v5  ;;  %v2979_v10 = vld [vmem:[#allocation7 + $0x1a8] sm:$0xff]  ;;  %v2926_v12 = vld [vmem:[#allocation2 + $0x30] sm:$0xfc] }
 0xecd   :  { %3159 = vmatprep.mubr.msk.f32.mxu1 %vm95_vm0, %v2707_v17  ;;  %v2709_v42 = vsel %vm319_vm9, %v2703_v2, %v2708_v19  ;;  %v2974_v2 = vld [vmem:[#allocation7 + $0x180] sm:$0xff]  ;;  %v2976_v17 = vld [vmem:[#allocation7 + $0x190] sm:$0xff]  ;;  %v2925_v19 = vld [vmem:[#allocation2 + $0x28] sm:$0x3] }
 0xece   :  { %2817 = vmatmul.mubr.f32.gmra.mrb[28].mxu1 %v2704_v46  ;;  %v2711_v9 = vsel %vm319_vm9, %v2706_v23, %v2710_v38  ;;  %v2973_v23 = vld [vmem:[#allocation7 + $0x178] sm:$0xff]  ;;  %v4019_v29 = vpack.c.bf16 %v2977_v25, %v2976_v17  ;;  %v2978_v46 = vld [vmem:[#allocation7 + $0x1a0] sm:$0xff] }
 0xecf   :  { %3978 = vmatpush1.bf16.msra.mxu1 %v3977_v13  ;;  %3160 = vmatprep.mubr.msk.f32.mxu1 %vm95_vm0, %v2711_v9  ;;  %v4016_v13 = vpack.c.bf16 %v2975_v39, %v2974_v2  ;;  %v4022_v38 = vpack.c.bf16 %v2979_v10, %v2978_v46  ;;  %v2939_v9 = vrot.slane %v5226_v63, 2 }
 0xed0   :  { %3979 = vmatprep.subr.bf16.mxu1 %v4303_v47 }
 0xed2   :  { %2822 = vmatmul.mubr.f32.gmra.mrb[30].mxu1 %v2709_v42  ;;  %v2946_v42 = vrot.slane %v2925_v19, 2 }
 0xed3   :  { %3981 = vmatpush1.bf16.msra.mxu1 %v3980_v33  ;;  %3161 = vmatprep.mubr.msk.f32.mxu1 %vm95_vm0, %v2647_v58  ;;  %v2938_v33 = vrot.slane %v2922_v6, 2 }
 0xed4   :  { %3982 = vmatprep.subr.bf16.mxu1 %v4303_v47  ;;  %v2947_v31 = vsel %vm567_vm10, %v2942_v55, %v2946_v42 }
 0xed5   :  { %v2940_v58 = vsel %vm567_vm10, %v2938_v33, %v2939_v9 }
 0xed7   :  { %3984 = vmatpush1.bf16.msra.mxu1 %v3983_v4  ;;  %v2944_v4 = vrot.slane %v2924_v44, 2 }
 0xed8   :  { %3985 = vmatprep.subr.bf16.mxu1 %v4303_v47 }
 0xed9   :  { %v2945_v15 = vsel %vm567_vm10, %v2939_v9, %v2944_v4 }
 0xedb   :  { %3987 = vmatpush1.bf16.msra.mxu1 %v3986_v7  ;;  %v2952_v7 = vrot.slane %v5243_v16, 2 }
 0xedc   :  { %3988 = vmatprep.subr.bf16.mxu1 %v4303_v47 }
 0xedd   :  { %v2953_v30 = vsel %vm567_vm10, %v2951_v14, %v2952_v7 }
 0xedf   :  { %3990 = vmatpush1.bf16.msra.mxu1 %v3989_v40  ;;  %v2949_v40 = vrot.slane %v5245_v51, 2 }
 0xee0   :  { %3991 = vmatprep.subr.bf16.mxu1 %v4303_v47 }
 0xee3   :  { %3993 = vmatpush1.bf16.msra.mxu1 %v3992_v28  ;;  %v2928_v28 = vld [vmem:[#allocation2 + $0x50] sm:$0x3] }
 0xee4   :  { %3994 = vmatprep.subr.bf16.mxu1 %v4303_v47  ;;  %v2954_v1 = vrot.slane %v2928_v28, 2 }
 0xee7   :  { %3996 = vmatpush1.bf16.msra.mxu1 %v3995_v21  ;;  %v2955_v21 = vsel %vm567_vm10, %v2949_v40, %v2954_v1 }
 0xee8   :  { %3997 = vmatprep.subr.bf16.mxu1 %v4303_v47 }
 0xeea   :  { %2902 = vmatmul.mubr.f32.vlgmr.msra.gmra.mrb[24].mxu1 %v2646_v62 }
 0xeeb   :  { %3162 = vmatprep.mubr.msk.f32.mxu1 %vm95_vm0, %v5224_v35  ;;  %3999 = vmatpush1.bf16.msra.mxu1 %v3998_v8  ;;  %v2972_v35 = vld [vmem:[#allocation7 + $0x170] sm:$0xff] }
 0xeec   :  { %4000 = vmatprep.subr.bf16.mxu1 %v4303_v47  ;;  %v4013_v45 = vpack.c.bf16 %v2973_v23, %v2972_v35 }
 0xeee   :  { %2907 = vmatmul.mubr.f32.gmra.mrb[26].mxu1 %v5226_v63  ;;  %v2948_v63 = vrot.slane %v2926_v12, 2 }
 0xeef   :  { %3163 = vmatprep.mubr.msk.f32.mxu1 %vm95_vm0, %v2651_v0  ;;  %4002 = vmatpush1.bf16.msra.mxu1 %v4001_v32 }
 0xef0   :  { %4003 = vmatprep.subr.bf16.mxu1 %v4303_v47  ;;  %v2950_v34 = vsel %vm567_vm10, %v2948_v63, %v2949_v40 }
 0xef2   :  { %2912 = vmatmul.mubr.f32.gmra.mrb[28].mxu1 %v2650_v11 }
 0xef3   :  { %3164 = vmatprep.mubr.msk.f32.mxu1 %vm95_vm0, %v5243_v16  ;;  %4005 = vmatpush1.bf16.msra.mxu1 %v4004_v61 }
 0xef4   :  { %4006 = vmatprep.subr.bf16.mxu1 %v4303_v47 }
 0xef6   :  { %2917 = vmatmul.mubr.f32.gmra.mrb[30].mxu1 %v5245_v51 }
 0xef7   :  { %4008 = vmatpush1.bf16.msra.mxu1 %v4007_v20  ;;  %3165 = vmatprep.mubr.msk.f32.mxu1 %vm95_vm0, %v2943_v36 }
 0xef8   :  { %4009 = vmatprep.subr.bf16.mxu1 %v4303_v47 }
 0xefb   :  { %4011 = vmatpush1.bf16.msra.mxu1 %v4010_v53 }
 0xefc   :  { %4012 = vmatprep.subr.bf16.mxu1 %v4303_v47 }
 0xeff   :  { %4014 = vmatpush1.bf16.msra.mxu1 %v4013_v45 }
 0xf00   :  { %4015 = vmatprep.subr.bf16.mxu1 %v4303_v47 }
 0xf03   :  { %4017 = vmatpush1.bf16.msra.mxu1 %v4016_v13 }
 0xf04   :  { %4018 = vmatprep.subr.bf16.mxu1 %v4303_v47 }
 0xf07   :  { %4020 = vmatpush1.bf16.msra.mxu1 %v4019_v29 }
 0xf08   :  { %4021 = vmatprep.subr.bf16.mxu1 %v4303_v47  ;;  %v2929_v47 = vld [vmem:[#allocation2 + $0x58] sm:$0x3] }
 0xf09   :  { %v2956_v18 = vrot.slane %v2929_v47, 2 }
 0xf0b   :  { %4023 = vmatpush1.bf16.msra.mxu1 %v4022_v38  ;;  %v2957_v16 = vsel %vm567_vm10, %v2952_v7, %v2956_v18 }
 0xf0e   :  { %3053 = vmatmul.mubr.f32.vlgmr.msra.gmra.mrb[24].mxu1 %v2940_v58 }
 0xf0f   :  { %3166 = vmatprep.mubr.msk.f32.mxu1 %vm95_vm0, %v2947_v31 }
 0xf12   :  { %3058 = vmatmul.mubr.f32.gmra.mrb[26].mxu1 %v2945_v15 }
 0xf13   :  { %3167 = vmatprep.mubr.msk.f32.mxu1 %vm95_vm0, %v2953_v30 }
 0xf16   :  { %3063 = vmatmul.mubr.f32.gmra.mrb[28].mxu1 %v2950_v34 }
 0xf17   :  { %3168 = vmatprep.mubr.msk.f32.mxu1 %vm95_vm0, %v2957_v16 }
 0xf1a   :  { %3068 = vmatmul.mubr.f32.gmra.mrb[30].mxu1 %v2955_v21 }
 0xfe1   :  { %v3054_v37 = vpop.f32.mrb[24].mxu1 }
 0xfe2   :  { %v3077_v51 = vmul.f32 %v3054_v37, %v4680_v54  ;;  %v3056_v59 = vpop.f32.mrb[25].mxu1 }
 0xfe4   :  { %v3081_v8 = vsub.f32 %v4683_v22, %v3077_v51 }
 0xfe5   :  { %v3059_v48 = vpop.f32.mrb[26].mxu1 }
 0xfe6   :  { %3085 = vst [vmem:[#allocation11] sm:$0xff] %v3081_v8  ;;  %v3078_v41 = vmul.f32 %v3059_v48, %v4680_v54  ;;  %v3061_v62 = vpop.f32.mrb[27].mxu1 }
 0xfe8   :  { %v3082_v32 = vsub.f32 %v4687_v49, %v3078_v41 }
 0xfe9   :  { %v3064_v43 = vpop.f32.mrb[28].mxu1 }
 0xfea   :  { %3086 = vst [vmem:[#allocation11 + $0x8] sm:$0xff] %v3082_v32  ;;  %v3079_v50 = vmul.f32 %v3064_v43, %v4680_v54  ;;  %v3066_v0 = vpop.f32.mrb[29].mxu1 }
 0xfec   :  { %v3083_v61 = vsub.f32 %v4692_v56, %v3079_v50 }
 0xfed   :  { %v3069_v57 = vpop.f32.mrb[30].mxu1 }
 0xfee   :  { %3087 = vst [vmem:[#allocation11 + $0x10] sm:$0xff] %v3083_v61  ;;  %v3080_v22 = vmul.f32 %v3069_v57, %v4680_v54  ;;  %v3071_v24 = vpop.f32.mrb[31].mxu1 }
 0xff0   :  { %v3084_v52 = vsub.f32 %v4697_v3, %v3080_v22 }
 0xff2   :  { %3088 = vst [vmem:[#allocation11 + $0x18] sm:$0xff] %v3084_v52 }
 0xff3   :  { %4278 = shalt.err (!%p4275_p5)
}
 0xff4   :  { %s4279_s11 = scalar_lea.hbm %s5322_s4, 512 }
 0xff5   :  { %p4280_p6 = scmp.ne.s32.totalorder %s5322_s4, %s4279_s11  ;;  %p4283_p7 = scmp.lt.u32.totalorder %s4279_s11, %s5322_s4 }
 0xff7   :  { %p4285_p8 = pnand %p4283_p7, %p4280_p6 }
 0xff9   :  { %4288 = shalt.err (!%p4285_p8)
}
 0xffa   :  { %3100 = dma.vmem_to_hbm [thread:$0]  %s3095_s7, 512, %s5322_s4, [#allocation5], %s4299_s27, %s4299_s27, %s4300_s28  }
 0xffb   :  { %4295 = dma.done.wait [#allocation5], 512  }
 0xffc   :  { %4296 = vsyncadd [#allocation5], 4294966784 }
 0xffd   :  { %3104 = vsyncpa [#allocation4], 1 }
 0xffe   :  { %3105 = vsyncpa [#allocation8], 1 }
 0xfff   :  { %3106 = vsyncpa [#allocation5], 1 }
0x1000   :  { %3107 = vsyncpa [#allocation6], 1 }

</bundles_post_ra>
